<compile_context>
chip_gen: v7x
topology: tpu7x:2x2x1
jax: 0.10.0
libtpu: 0.0.40
codegen_flags: <defaults>
</compile_context>

<pallas_src>
import jax
import jax.numpy as jnp
from jax.experimental import pallas as pl
from jax.experimental.pallas import tpu as pltpu


def _dw_corr_kernel(x_ref, z_ref, o_ref):
    """Depthwise cross-correlation for one lane-aligned channel chunk.

    x_ref: (Hx, Wx, CN)  search features      (channels on the lane axis)
    z_ref: (Hz, Wz, CN)  template features (correlation kernel)
    o_ref: (Ho, Wo, CN)  output, Ho = Hx - Hz + 1, Wo = Wx - Wz + 1
    """
    hz, wz, _ = z_ref.shape
    ho, wo, _ = o_ref.shape

    # Upcast once per block (not per tap); accumulate in f32, downcast once.
    x = x_ref[...].astype(jnp.float32)   # (Hx, Wx, CN)
    z = z_ref[...].astype(jnp.float32)   # (Hz, Wz, CN)

    acc = jnp.zeros(o_ref.shape, jnp.float32)
    # v-outer / u-inner: the W-offset slice `v:v+wo` moves along the sublane
    # axis and is misaligned for most offsets, so it is hoisted out of the
    # inner loop (Wz realignments instead of Hz*Wz).  The inner `u:u+ho` slice
    # only offsets the untiled H axis and is free; z[u, v] is a lane-contiguous
    # (CN,) vector broadcast over the (Ho, Wo) axes, so the hot loop stays on
    # the VALU slot.  No kernel flip (conv2d == cross-correlation for this
    # depthwise use).
    for v in range(wz):
        x_v = x[:, v:v + wo, :]          # (Hx, Wo, CN) -- one sublane slice per v
        for u in range(hz):
            acc = acc + x_v[u:u + ho, :, :] * z[u, v]

    o_ref[...] = acc.astype(o_ref.dtype)


@jax.jit
def rpn_forward(z_f, x_f):
    """SiamMask RPN depthwise cross-correlation.

    z_f: (B, C, Hz, Wz), x_f: (B, C, Hx, Wx)  ->  (B, C, Ho, Wo)
    """
    B, C, Hz, Wz = z_f.shape
    Bx, Cx, Hx, Wx = x_f.shape
    assert (B, C) == (Bx, Cx), "template/search batch & channel dims must match"
    Ho, Wo = Hx - Hz + 1, Wx - Wz + 1
    N = B * C

    # Wrapper-side layout plumbing: NCHW -> channel-last (H, W, N) so B*C maps
    # onto the 128-wide lane axis inside the kernel.  allow_input_fusion below
    # lets XLA fuse these transposes into the pallas_call operands.
    x_cl = x_f.reshape(N, Hx, Wx).transpose(1, 2, 0)   # (Hx, Wx, N)
    z_cl = z_f.reshape(N, Hz, Wz).transpose(1, 2, 0)   # (Hz, Wz, N)

    # Lane blocking: 128-wide chunks when N >= 128 (pad N up to a multiple of
    # 128 so blocks stay lane-dense and per-step VMEM is bounded), otherwise a
    # single full-width block for small N.
    if N >= 128:
        CN = 128
        N_pad = ((N + 127) // 128) * 128
    else:
        CN = N
        N_pad = N
    if N_pad != N:
        pad = N_pad - N
        x_cl = jnp.pad(x_cl, ((0, 0), (0, 0), (0, pad)))
        z_cl = jnp.pad(z_cl, ((0, 0), (0, 0), (0, pad)))
    n_blocks = N_pad // CN

    itemsize = jnp.dtype(x_f.dtype).itemsize
    cost = pl.CostEstimate(
        flops=2 * N_pad * Ho * Wo * Hz * Wz,
        transcendentals=0,
        bytes_accessed=itemsize * N_pad * (Hx * Wx + Hz * Wz + Ho * Wo),
    )

    out_cl = pl.pallas_call(
        _dw_corr_kernel,
        out_shape=jax.ShapeDtypeStruct((Ho, Wo, N_pad), x_f.dtype),
        grid=(n_blocks,),
        in_specs=[
            # Last two block dims are either full array extents (W axes) or a
            # 128-multiple / full-extent channel chunk -> satisfies the (8,128)
            # rule and gives lane-dense stores.
            pl.BlockSpec((Hx, Wx, CN), lambda n: (0, 0, n)),
            pl.BlockSpec((Hz, Wz, CN), lambda n: (0, 0, n)),
        ],
        out_specs=pl.BlockSpec((Ho, Wo, CN), lambda n: (0, 0, n)),
        compiler_params=pltpu.CompilerParams(
            dimension_semantics=("parallel",),
            allow_input_fusion=[True, True],
        ),
        cost_estimate=cost,
    )(x_cl, z_cl)

    # Crop padded channels, then (Ho, Wo, N) -> (B, C, Ho, Wo).
    out_cl = out_cl[:, :, :N]
    return out_cl.transpose(2, 0, 1).reshape(B, C, Ho, Wo)


def _ref_dw_corr(z_f, x_f):
    """Pure-JAX reference: F.conv2d(x, z, groups=B*C) semantics."""
    B, C, Hz, Wz = z_f.shape
    _, _, Hx, Wx = x_f.shape
    x = x_f.reshape(1, B * C, Hx, Wx)
    k = z_f.reshape(B * C, 1, Hz, Wz)
    out = jax.lax.conv_general_dilated(
        x, k, window_strides=(1, 1), padding="VALID",
        dimension_numbers=("NCHW", "OIHW", "NCHW"),
        feature_group_count=B * C)
    return out.reshape(B, C, out.shape[2], out.shape[3])


if __name__ == "__main__":
    key = jax.random.PRNGKey(0)
    k1, k2, k3, k4 = jax.random.split(key, 4)

    # Small-shape check (single lane block, N = 16 < 128).
    B, C = 2, 8
    Hx = Wx = 16          # search feature spatial size
    Hz = Wz = 4           # template feature spatial size
    x_f = jax.random.normal(k1, (B, C, Hx, Wx), dtype=jnp.float32)
    z_f = jax.random.normal(k2, (B, C, Hz, Wz), dtype=jnp.float32)

    out = jax.block_until_ready(rpn_forward(z_f, x_f))
    ref = _ref_dw_corr(z_f, x_f)
    assert out.shape == (B, C, Hx - Hz + 1, Wx - Wz + 1), out.shape
    assert jnp.allclose(out, ref, atol=1e-4, rtol=1e-4), "mismatch vs reference (small)"

    # Multi-block + channel-padding path (N = 144 -> padded to 256, CN = 128,
    # two parallel grid steps).
    B2, C2 = 1, 144
    x_f2 = jax.random.normal(k3, (B2, C2, Hx, Wx), dtype=jnp.float32)
    z_f2 = jax.random.normal(k4, (B2, C2, Hz, Wz), dtype=jnp.float32)

    out2 = jax.block_until_ready(rpn_forward(z_f2, x_f2))
    ref2 = _ref_dw_corr(z_f2, x_f2)
    assert out2.shape == (B2, C2, Hx - Hz + 1, Wx - Wz + 1), out2.shape
    assert jnp.allclose(out2, ref2, atol=1e-4, rtol=1e-4), "mismatch vs reference (padded)"

    print("KERNEL_OK")
</pallas_src>

<mosaic_0001>
module attributes {stable_mosaic.version = 11 : i64} {
  func.func @_dw_corr_kernel(%arg0: i32, %arg1: memref<16x16x16xf32, #tpu.memory_space<vmem>>, %arg2: memref<4x4x16xf32, #tpu.memory_space<vmem>>, %arg3: memref<13x13x16xf32, #tpu.memory_space<vmem>>) attributes {dimension_semantics = [#tpu.dimension_semantics<parallel>], iteration_bounds = array<i64: 1>, scalar_prefetch = 0 : i64, scratch_operands = 0 : i64, tpu.core_type = #tpu.core_type<tc>, window_params = [{transform_indices = @transform_0, window_bounds = array<i64: 16, 16, 16>}, {transform_indices = @transform_1, window_bounds = array<i64: 4, 4, 16>}, {transform_indices = @transform_2, window_bounds = array<i64: 13, 13, 16>}]} {
    %c0 = arith.constant 0 : index
    %c0_0 = arith.constant 0 : index
    %c0_1 = arith.constant 0 : index
    %0 = vector.load %arg1[%c0, %c0_0, %c0_1] : memref<16x16x16xf32, #tpu.memory_space<vmem>>, vector<16x16x16xf32>
    %c0_2 = arith.constant 0 : index
    %c0_3 = arith.constant 0 : index
    %c0_4 = arith.constant 0 : index
    %1 = vector.load %arg2[%c0_2, %c0_3, %c0_4] : memref<4x4x16xf32, #tpu.memory_space<vmem>>, vector<4x4x16xf32>
    %cst = arith.constant 0.000000e+00 : f32
    %2 = vector.broadcast %cst : f32 to vector<13x13x16xf32>
    %3 = vector.extract_strided_slice %0 {offsets = [0, 0, 0], sizes = [16, 13, 16], strides = [1, 1, 1]} : vector<16x16x16xf32> to vector<16x13x16xf32>
    %4 = vector.extract_strided_slice %3 {offsets = [0, 0, 0], sizes = [13, 13, 16], strides = [1, 1, 1]} : vector<16x13x16xf32> to vector<13x13x16xf32>
    %5 = vector.extract_strided_slice %1 {offsets = [0, 0, 0], sizes = [1, 1, 16], strides = [1, 1, 1]} : vector<4x4x16xf32> to vector<1x1x16xf32>
    %6 = vector.shape_cast %5 : vector<1x1x16xf32> to vector<16xf32>
    %7 = vector.shape_cast %6 : vector<16xf32> to vector<1x1x16xf32>
    %8 = vector.broadcast %7 : vector<1x1x16xf32> to vector<13x13x16xf32>
    %9 = arith.mulf %4, %8 : vector<13x13x16xf32>
    %10 = arith.addf %2, %9 : vector<13x13x16xf32>
    %11 = vector.extract_strided_slice %3 {offsets = [1, 0, 0], sizes = [13, 13, 16], strides = [1, 1, 1]} : vector<16x13x16xf32> to vector<13x13x16xf32>
    %12 = vector.extract_strided_slice %1 {offsets = [1, 0, 0], sizes = [1, 1, 16], strides = [1, 1, 1]} : vector<4x4x16xf32> to vector<1x1x16xf32>
    %13 = vector.shape_cast %12 : vector<1x1x16xf32> to vector<16xf32>
    %14 = vector.shape_cast %13 : vector<16xf32> to vector<1x1x16xf32>
    %15 = vector.broadcast %14 : vector<1x1x16xf32> to vector<13x13x16xf32>
    %16 = arith.mulf %11, %15 : vector<13x13x16xf32>
    %17 = arith.addf %10, %16 : vector<13x13x16xf32>
    %18 = vector.extract_strided_slice %3 {offsets = [2, 0, 0], sizes = [13, 13, 16], strides = [1, 1, 1]} : vector<16x13x16xf32> to vector<13x13x16xf32>
    %19 = vector.extract_strided_slice %1 {offsets = [2, 0, 0], sizes = [1, 1, 16], strides = [1, 1, 1]} : vector<4x4x16xf32> to vector<1x1x16xf32>
    %20 = vector.shape_cast %19 : vector<1x1x16xf32> to vector<16xf32>
    %21 = vector.shape_cast %20 : vector<16xf32> to vector<1x1x16xf32>
    %22 = vector.broadcast %21 : vector<1x1x16xf32> to vector<13x13x16xf32>
    %23 = arith.mulf %18, %22 : vector<13x13x16xf32>
    %24 = arith.addf %17, %23 : vector<13x13x16xf32>
    %25 = vector.extract_strided_slice %3 {offsets = [3, 0, 0], sizes = [13, 13, 16], strides = [1, 1, 1]} : vector<16x13x16xf32> to vector<13x13x16xf32>
    %26 = vector.extract_strided_slice %1 {offsets = [3, 0, 0], sizes = [1, 1, 16], strides = [1, 1, 1]} : vector<4x4x16xf32> to vector<1x1x16xf32>
    %27 = vector.shape_cast %26 : vector<1x1x16xf32> to vector<16xf32>
    %28 = vector.shape_cast %27 : vector<16xf32> to vector<1x1x16xf32>
    %29 = vector.broadcast %28 : vector<1x1x16xf32> to vector<13x13x16xf32>
    %30 = arith.mulf %25, %29 : vector<13x13x16xf32>
    %31 = arith.addf %24, %30 : vector<13x13x16xf32>
    %32 = vector.extract_strided_slice %0 {offsets = [0, 1, 0], sizes = [16, 13, 16], strides = [1, 1, 1]} : vector<16x16x16xf32> to vector<16x13x16xf32>
    %33 = vector.extract_strided_slice %32 {offsets = [0, 0, 0], sizes = [13, 13, 16], strides = [1, 1, 1]} : vector<16x13x16xf32> to vector<13x13x16xf32>
    %34 = vector.extract_strided_slice %1 {offsets = [0, 1, 0], sizes = [1, 1, 16], strides = [1, 1, 1]} : vector<4x4x16xf32> to vector<1x1x16xf32>
    %35 = vector.shape_cast %34 : vector<1x1x16xf32> to vector<16xf32>
    %36 = vector.shape_cast %35 : vector<16xf32> to vector<1x1x16xf32>
    %37 = vector.broadcast %36 : vector<1x1x16xf32> to vector<13x13x16xf32>
    %38 = arith.mulf %33, %37 : vector<13x13x16xf32>
    %39 = arith.addf %31, %38 : vector<13x13x16xf32>
    %40 = vector.extract_strided_slice %32 {offsets = [1, 0, 0], sizes = [13, 13, 16], strides = [1, 1, 1]} : vector<16x13x16xf32> to vector<13x13x16xf32>
    %41 = vector.extract_strided_slice %1 {offsets = [1, 1, 0], sizes = [1, 1, 16], strides = [1, 1, 1]} : vector<4x4x16xf32> to vector<1x1x16xf32>
    %42 = vector.shape_cast %41 : vector<1x1x16xf32> to vector<16xf32>
    %43 = vector.shape_cast %42 : vector<16xf32> to vector<1x1x16xf32>
    %44 = vector.broadcast %43 : vector<1x1x16xf32> to vector<13x13x16xf32>
    %45 = arith.mulf %40, %44 : vector<13x13x16xf32>
    %46 = arith.addf %39, %45 : vector<13x13x16xf32>
    %47 = vector.extract_strided_slice %32 {offsets = [2, 0, 0], sizes = [13, 13, 16], strides = [1, 1, 1]} : vector<16x13x16xf32> to vector<13x13x16xf32>
    %48 = vector.extract_strided_slice %1 {offsets = [2, 1, 0], sizes = [1, 1, 16], strides = [1, 1, 1]} : vector<4x4x16xf32> to vector<1x1x16xf32>
    %49 = vector.shape_cast %48 : vector<1x1x16xf32> to vector<16xf32>
    %50 = vector.shape_cast %49 : vector<16xf32> to vector<1x1x16xf32>
    %51 = vector.broadcast %50 : vector<1x1x16xf32> to vector<13x13x16xf32>
    %52 = arith.mulf %47, %51 : vector<13x13x16xf32>
    %53 = arith.addf %46, %52 : vector<13x13x16xf32>
    %54 = vector.extract_strided_slice %32 {offsets = [3, 0, 0], sizes = [13, 13, 16], strides = [1, 1, 1]} : vector<16x13x16xf32> to vector<13x13x16xf32>
    %55 = vector.extract_strided_slice %1 {offsets = [3, 1, 0], sizes = [1, 1, 16], strides = [1, 1, 1]} : vector<4x4x16xf32> to vector<1x1x16xf32>
    %56 = vector.shape_cast %55 : vector<1x1x16xf32> to vector<16xf32>
    %57 = vector.shape_cast %56 : vector<16xf32> to vector<1x1x16xf32>
    %58 = vector.broadcast %57 : vector<1x1x16xf32> to vector<13x13x16xf32>
    %59 = arith.mulf %54, %58 : vector<13x13x16xf32>
    %60 = arith.addf %53, %59 : vector<13x13x16xf32>
    %61 = vector.extract_strided_slice %0 {offsets = [0, 2, 0], sizes = [16, 13, 16], strides = [1, 1, 1]} : vector<16x16x16xf32> to vector<16x13x16xf32>
    %62 = vector.extract_strided_slice %61 {offsets = [0, 0, 0], sizes = [13, 13, 16], strides = [1, 1, 1]} : vector<16x13x16xf32> to vector<13x13x16xf32>
    %63 = vector.extract_strided_slice %1 {offsets = [0, 2, 0], sizes = [1, 1, 16], strides = [1, 1, 1]} : vector<4x4x16xf32> to vector<1x1x16xf32>
    %64 = vector.shape_cast %63 : vector<1x1x16xf32> to vector<16xf32>
    %65 = vector.shape_cast %64 : vector<16xf32> to vector<1x1x16xf32>
    %66 = vector.broadcast %65 : vector<1x1x16xf32> to vector<13x13x16xf32>
    %67 = arith.mulf %62, %66 : vector<13x13x16xf32>
    %68 = arith.addf %60, %67 : vector<13x13x16xf32>
    %69 = vector.extract_strided_slice %61 {offsets = [1, 0, 0], sizes = [13, 13, 16], strides = [1, 1, 1]} : vector<16x13x16xf32> to vector<13x13x16xf32>
    %70 = vector.extract_strided_slice %1 {offsets = [1, 2, 0], sizes = [1, 1, 16], strides = [1, 1, 1]} : vector<4x4x16xf32> to vector<1x1x16xf32>
    %71 = vector.shape_cast %70 : vector<1x1x16xf32> to vector<16xf32>
    %72 = vector.shape_cast %71 : vector<16xf32> to vector<1x1x16xf32>
    %73 = vector.broadcast %72 : vector<1x1x16xf32> to vector<13x13x16xf32>
    %74 = arith.mulf %69, %73 : vector<13x13x16xf32>
    %75 = arith.addf %68, %74 : vector<13x13x16xf32>
    %76 = vector.extract_strided_slice %61 {offsets = [2, 0, 0], sizes = [13, 13, 16], strides = [1, 1, 1]} : vector<16x13x16xf32> to vector<13x13x16xf32>
    %77 = vector.extract_strided_slice %1 {offsets = [2, 2, 0], sizes = [1, 1, 16], strides = [1, 1, 1]} : vector<4x4x16xf32> to vector<1x1x16xf32>
    %78 = vector.shape_cast %77 : vector<1x1x16xf32> to vector<16xf32>
    %79 = vector.shape_cast %78 : vector<16xf32> to vector<1x1x16xf32>
    %80 = vector.broadcast %79 : vector<1x1x16xf32> to vector<13x13x16xf32>
    %81 = arith.mulf %76, %80 : vector<13x13x16xf32>
    %82 = arith.addf %75, %81 : vector<13x13x16xf32>
    %83 = vector.extract_strided_slice %61 {offsets = [3, 0, 0], sizes = [13, 13, 16], strides = [1, 1, 1]} : vector<16x13x16xf32> to vector<13x13x16xf32>
    %84 = vector.extract_strided_slice %1 {offsets = [3, 2, 0], sizes = [1, 1, 16], strides = [1, 1, 1]} : vector<4x4x16xf32> to vector<1x1x16xf32>
    %85 = vector.shape_cast %84 : vector<1x1x16xf32> to vector<16xf32>
    %86 = vector.shape_cast %85 : vector<16xf32> to vector<1x1x16xf32>
    %87 = vector.broadcast %86 : vector<1x1x16xf32> to vector<13x13x16xf32>
    %88 = arith.mulf %83, %87 : vector<13x13x16xf32>
    %89 = arith.addf %82, %88 : vector<13x13x16xf32>
    %90 = vector.extract_strided_slice %0 {offsets = [0, 3, 0], sizes = [16, 13, 16], strides = [1, 1, 1]} : vector<16x16x16xf32> to vector<16x13x16xf32>
    %91 = vector.extract_strided_slice %90 {offsets = [0, 0, 0], sizes = [13, 13, 16], strides = [1, 1, 1]} : vector<16x13x16xf32> to vector<13x13x16xf32>
    %92 = vector.extract_strided_slice %1 {offsets = [0, 3, 0], sizes = [1, 1, 16], strides = [1, 1, 1]} : vector<4x4x16xf32> to vector<1x1x16xf32>
    %93 = vector.shape_cast %92 : vector<1x1x16xf32> to vector<16xf32>
    %94 = vector.shape_cast %93 : vector<16xf32> to vector<1x1x16xf32>
    %95 = vector.broadcast %94 : vector<1x1x16xf32> to vector<13x13x16xf32>
    %96 = arith.mulf %91, %95 : vector<13x13x16xf32>
    %97 = arith.addf %89, %96 : vector<13x13x16xf32>
    %98 = vector.extract_strided_slice %90 {offsets = [1, 0, 0], sizes = [13, 13, 16], strides = [1, 1, 1]} : vector<16x13x16xf32> to vector<13x13x16xf32>
    %99 = vector.extract_strided_slice %1 {offsets = [1, 3, 0], sizes = [1, 1, 16], strides = [1, 1, 1]} : vector<4x4x16xf32> to vector<1x1x16xf32>
    %100 = vector.shape_cast %99 : vector<1x1x16xf32> to vector<16xf32>
    %101 = vector.shape_cast %100 : vector<16xf32> to vector<1x1x16xf32>
    %102 = vector.broadcast %101 : vector<1x1x16xf32> to vector<13x13x16xf32>
    %103 = arith.mulf %98, %102 : vector<13x13x16xf32>
    %104 = arith.addf %97, %103 : vector<13x13x16xf32>
    %105 = vector.extract_strided_slice %90 {offsets = [2, 0, 0], sizes = [13, 13, 16], strides = [1, 1, 1]} : vector<16x13x16xf32> to vector<13x13x16xf32>
    %106 = vector.extract_strided_slice %1 {offsets = [2, 3, 0], sizes = [1, 1, 16], strides = [1, 1, 1]} : vector<4x4x16xf32> to vector<1x1x16xf32>
    %107 = vector.shape_cast %106 : vector<1x1x16xf32> to vector<16xf32>
    %108 = vector.shape_cast %107 : vector<16xf32> to vector<1x1x16xf32>
    %109 = vector.broadcast %108 : vector<1x1x16xf32> to vector<13x13x16xf32>
    %110 = arith.mulf %105, %109 : vector<13x13x16xf32>
    %111 = arith.addf %104, %110 : vector<13x13x16xf32>
    %112 = vector.extract_strided_slice %90 {offsets = [3, 0, 0], sizes = [13, 13, 16], strides = [1, 1, 1]} : vector<16x13x16xf32> to vector<13x13x16xf32>
    %113 = vector.extract_strided_slice %1 {offsets = [3, 3, 0], sizes = [1, 1, 16], strides = [1, 1, 1]} : vector<4x4x16xf32> to vector<1x1x16xf32>
    %114 = vector.shape_cast %113 : vector<1x1x16xf32> to vector<16xf32>
    %115 = vector.shape_cast %114 : vector<16xf32> to vector<1x1x16xf32>
    %116 = vector.broadcast %115 : vector<1x1x16xf32> to vector<13x13x16xf32>
    %117 = arith.mulf %112, %116 : vector<13x13x16xf32>
    %118 = arith.addf %111, %117 : vector<13x13x16xf32>
    %c0_5 = arith.constant 0 : index
    %c0_6 = arith.constant 0 : index
    %c0_7 = arith.constant 0 : index
    %119 = vector.load %arg3[%c0_5, %c0_6, %c0_7] : memref<13x13x16xf32, #tpu.memory_space<vmem>>, vector<13x13x16xf32>
    tpu.vector_store %arg3[%c0_5, %c0_6, %c0_7], %118 {strides = array<i32>} : memref<13x13x16xf32, #tpu.memory_space<vmem>>, vector<13x13x16xf32>,
    return
  }
  func.func @transform_0(%arg0: i32) -> (i32, i32, i32) {
    %c0_i32 = arith.constant 0 : i32
    %c0_i32_0 = arith.constant 0 : i32
    %c0_i32_1 = arith.constant 0 : i32
    return %c0_i32, %c0_i32_0, %arg0 : i32, i32, i32
  }
  func.func @transform_1(%arg0: i32) -> (i32, i32, i32) {
    %c0_i32 = arith.constant 0 : i32
    %c0_i32_0 = arith.constant 0 : i32
    %c0_i32_1 = arith.constant 0 : i32
    return %c0_i32, %c0_i32_0, %arg0 : i32, i32, i32
  }
  func.func @transform_2(%arg0: i32) -> (i32, i32, i32) {
    %c0_i32 = arith.constant 0 : i32
    %c0_i32_0 = arith.constant 0 : i32
    %c0_i32_1 = arith.constant 0 : i32
    return %c0_i32, %c0_i32_0, %arg0 : i32, i32, i32
  }
}

</mosaic_0001>

<bundles_post_ra>
// kernel: rpn_forward.2
= control target key start
LH: loop header
LB: loop body
LE: loop exit
PB: predicated region body
PF: predicated region fallthrough
CT: control target
= control target key end

     0   :  { %v223_v0 = vlaneseq  ;;  %vm503_vm0 = vcmask 1046528   ;;  %vm1092_vm1 = vcmask 1045504   ;;  %vm1681_vm2 = vcmask 1044480   ;;  %s5285_s0 = inlined_call_operand.vmem [shape: f32[16,16,16], index: 0, kind: input, shape index: {}]   ;;  %s5286_s1 = inlined_call_operand.vmem [shape: f32[16,4,4], index: 1, kind: input, shape index: {}]   ;;  %s5287_s2 = inlined_call_operand.vmem [shape: f32[13,13,16], index: 2, kind: output, shape index: {}]  }
   0x1   :  { %v169_v1 = vld [vmem:[%s5286_s1] sm:$0xff]   ;;  %v2278_v2 = vld [vmem:[%s5286_s1 + $0x8] sm:$0xff]   ;;  %v2380_v8 = vld [vmem:[%s5285_s0 + $0x10] sm:$0xff]  ;;  %vm2214_vm3 = vcmask 130048   ;;  %vm2216_vm4 = vcmask 126976  }
   0x2   :  { %171 = vst [vmem:[#allocation3] sm:$0xff] %v169_v1   ;;  %v2363_v3 = vshrl.u32 %v223_v0, 7  ;;  %181 = vst [vmem:[#allocation3 + $0x8] sm:$0xff] %v2278_v2   ;;  %v2370_v6 = vld [vmem:[%s5285_s0] sm:$0xff]  ;;  %v2375_v7 = vld [vmem:[%s5285_s0 + $0x8] sm:$0xff] }
   0x3   :  { %5446 = vst [vmem:[#allocation5_spill] sm:$0xff] %v2370_v6  ;;  %5447 = vst [vmem:[#allocation6_spill] sm:$0xff] %v2375_v7  ;;  %v2385_v11 = vld [vmem:[%s5285_s0 + $0x18] sm:$0xff]  ;;  %v2390_v12 = vld [vmem:[%s5285_s0 + $0x20] sm:$0xff] }
   0x4   :  { %5445 = vst [vmem:[#allocation4_spill] sm:$0xff] %v2363_v3  ;;  %v225_v4 = vsub.s32 0, %v2363_v3  ;;  %v449_v5 = vsub.s32 1, %v2363_v3  ;;  %5448 = vst [vmem:[#allocation7_spill] sm:$0xff] %v2380_v8  ;;  %v2395_v16 = vld [vmem:[%s5285_s0 + $0x28] sm:$0xff]  ;;  %v2400_v17 = vld [vmem:[%s5285_s0 + $0x30] sm:$0xff] }
   0x5   :  { %5449 = vst [vmem:[#allocation8_spill] sm:$0xff] %v2385_v11  ;;  %5450 = vst [vmem:[#allocation9_spill] sm:$0xff] %v2390_v12  ;;  %v2405_v18 = vld [vmem:[%s5285_s0 + $0x38] sm:$0xff]  ;;  %v2410_v19 = vld [vmem:[%s5285_s0 + $0x40] sm:$0xff] }
   0x6   :  { %5451 = vst [vmem:[#allocation10_spill] sm:$0xff] %v2395_v16  ;;  %5452 = vst [vmem:[#allocation11_spill] sm:$0xff] %v2400_v17  ;;  %v2415_v20 = vld [vmem:[%s5285_s0 + $0x48] sm:$0xff]  ;;  %v2420_v21 = vld [vmem:[%s5285_s0 + $0x50] sm:$0xff] }
   0x7   :  { %5453 = vst [vmem:[#allocation12_spill] sm:$0xff] %v2405_v18  ;;  %5454 = vst [vmem:[#allocation13_spill] sm:$0xff] %v2410_v19  ;;  %v2429_v24 = vld [vmem:[%s5285_s0 + $0x58] sm:$0xff]  ;;  %v2434_v25 = vld [vmem:[%s5285_s0 + $0x60] sm:$0xff] }
   0x8   :  { %5455 = vst [vmem:[#allocation14_spill] sm:$0xff] %v2415_v20  ;;  %5456 = vst [vmem:[#allocation15_spill] sm:$0xff] %v2420_v21  ;;  %v2439_v26 = vld [vmem:[%s5285_s0 + $0x68] sm:$0xff]  ;;  %v2452_v31 = vld [vmem:[%s5285_s0 + $0x70] sm:$0xff] }
   0x9   :  { %v219_v9 = vld [vmem:[#allocation3] sm:$0xf]  ;;  %v220_v10 = vld [vmem:[#allocation3 + $0x4] sm:$0xf]  ;;  %v221_v13 = vld [vmem:[#allocation3 + $0x8] sm:$0xf] }
   0xa   :  { %v222_v14 = vld [vmem:[#allocation3 + $0xc] sm:$0xf]  ;;  %v226_v15 = vrot.slane %v219_v9, %v225_v4  ;;  %v2422_v22 = vrot.slane %v220_v10, %v225_v4  ;;  %v2424_v23 = vrot.slane %v219_v9, %v449_v5  ;;  %5458 = vst [vmem:[#allocation17_spill] sm:$0xff] %v2429_v24  ;;  %5459 = vst [vmem:[#allocation18_spill] sm:$0xff] %v2434_v25  ;;  %v2457_v32 = vld [vmem:[%s5285_s0 + $0x78] sm:$0xff] }
   0xb   :  { %5460 = vst [vmem:[#allocation19_spill] sm:$0xff] %v2439_v26  ;;  %v2441_v27 = vrot.slane %v221_v13, %v225_v4  ;;  %v2443_v28 = vrot.slane %v222_v14, %v225_v4  ;;  %v2445_v29 = vrot.slane %v220_v10, %v449_v5  ;;  %v2447_v30 = vrot.slane %v221_v13, %v449_v5  ;;  %v2462_v33 = vld [vmem:[%s5285_s0 + $0x80] sm:$0xff]  ;;  %v2478_v38 = vld [vmem:[%s5285_s0 + $0x88] sm:$0xff]  ;;  %v2483_v39 = vld [vmem:[%s5285_s0 + $0x90] sm:$0xff] }
   0xc   :  { %5457 = vst [vmem:[#allocation16_spill] sm:$0xff] %v2424_v23  ;;  %5465 = vst [vmem:[#allocation24_spill] sm:$0xff] %v2452_v31  ;;  %v2465_v34 = vmul.f32 %v226_v15, %v2370_v6  ;;  %v2468_v35 = vmul.f32 %v2375_v7, %v226_v15  ;;  %v2471_v36 = vmul.f32 %v2380_v8, %v226_v15  ;;  %v2488_v40 = vld [vmem:[%s5285_s0 + $0x98] sm:$0xff]  ;;  %v2497_v45 = vld [vmem:[%s5285_s0 + $0xa0] sm:$0xff] }
   0xd   :  { %5461 = vst [vmem:[#allocation20_spill] sm:$0xff] %v2441_v27  ;;  %5462 = vst [vmem:[#allocation21_spill] sm:$0xff] %v2443_v28  ;;  %v2473_v37 = vrot.slane %v222_v14, %v449_v5  ;;  %v230_v41 = vmul.f32 %v2385_v11, %v226_v15  ;;  %v231_v42 = vmul.f32 %v2390_v12, %v226_v15  ;;  %v2502_v46 = vld [vmem:[%s5285_s0 + $0xa8] sm:$0xff]  ;;  %v2507_v47 = vld [vmem:[%s5285_s0 + $0xb0] sm:$0xff] }
   0xe   :  { %5463 = vst [vmem:[#allocation22_spill] sm:$0xff] %v2445_v29  ;;  %5464 = vst [vmem:[#allocation23_spill] sm:$0xff] %v2447_v30  ;;  %v232_v43 = vmul.f32 %v2395_v16, %v226_v15  ;;  %v233_v44 = vmul.f32 %v2400_v17, %v226_v15  ;;  %v234_v48 = vmul.f32 %v2405_v18, %v226_v15  ;;  %v2516_v52 = vld [vmem:[%s5285_s0 + $0xb8] sm:$0xff]  ;;  %v2521_v53 = vld [vmem:[%s5285_s0 + $0xc0] sm:$0xff] }
   0xf   :  { %5466 = vst [vmem:[#allocation25_spill] sm:$0xff] %v2457_v32  ;;  %5467 = vst [vmem:[#allocation26_spill] sm:$0xff] %v2462_v33  ;;  %v235_v49 = vmul.f32 %v2410_v19, %v226_v15  ;;  %v236_v50 = vmul.f32 %v2415_v20, %v226_v15  ;;  %v237_v51 = vmul.f32 %v2420_v21, %v226_v15  ;;  %v2526_v54 = vld [vmem:[%s5285_s0 + $0xc8] sm:$0xff] }
  0x10   :  { %5468 = vst [vmem:[#allocation27_spill] sm:$0xff] %v2473_v37  ;;  %5469 = vst [vmem:[#allocation28_spill] sm:$0xff] %v2478_v38  ;;  %v238_v55 = vmul.f32 %v2429_v24, %v226_v15  ;;  %v239_v56 = vmul.f32 %v2434_v25, %v226_v15  ;;  %v240_v57 = vmul.f32 %v2439_v26, %v226_v15 }
  0x11   :  { %5470 = vst [vmem:[#allocation29_spill] sm:$0xff] %v2483_v39  ;;  %5471 = vst [vmem:[#allocation30_spill] sm:$0xff] %v2488_v40  ;;  %v241_v58 = vmul.f32 %v2452_v31, %v226_v15  ;;  %v242_v59 = vmul.f32 %v2457_v32, %v226_v15  ;;  %v243_v60 = vmul.f32 %v2462_v33, %v226_v15 }
  0x12   :  { %5472 = vst [vmem:[#allocation31_spill] sm:$0xff] %v2497_v45  ;;  %5473 = vst [vmem:[#allocation32_spill] sm:$0xff] %v2502_v46  ;;  %v244_v61 = vmul.f32 %v2478_v38, %v226_v15  ;;  %v245_v62 = vmul.f32 %v2483_v39, %v226_v15  ;;  %v246_v63 = vmul.f32 %v2488_v40, %v226_v15 }
  0x13   :  { %5474 = vst [vmem:[#allocation33_spill] sm:$0xff] %v2507_v47  ;;  %5475 = vst [vmem:[#allocation34_spill] sm:$0xff] %v2516_v52  ;;  %v247_v0 = vmul.f32 %v2497_v45, %v226_v15  ;;  %v248_v1 = vmul.f32 %v2502_v46, %v226_v15  ;;  %v249_v2 = vmul.f32 %v2507_v47, %v226_v15 }
  0x14   :  { %5476 = vst [vmem:[#allocation35_spill] sm:$0xff] %v2521_v53  ;;  %5477 = vst [vmem:[#allocation36_spill] sm:$0xff] %v2526_v54  ;;  %v250_v4 = vmul.f32 %v2516_v52, %v226_v15  ;;  %v251_v5 = vmul.f32 %v2521_v53, %v226_v15  ;;  %v252_v9 = vmul.f32 %v2526_v54, %v226_v15 }
  0x15   :  { %v283_v10 = vmul.f32 %v2380_v8, %v2422_v22  ;;  %v284_v13 = vmul.f32 %v2385_v11, %v2422_v22  ;;  %v285_v14 = vmul.f32 %v2390_v12, %v2422_v22  ;;  %v286_v3 = vmul.f32 %v2395_v16, %v2422_v22  ;;  %v2564_v8 = vld [vmem:[%s5285_s0 + $0xd0] sm:$0xff] }
  0x16   :  { %v287_v37 = vmul.f32 %v2400_v17, %v2422_v22  ;;  %v288_v30 = vmul.f32 %v2405_v18, %v2422_v22  ;;  %v289_v15 = vmul.f32 %v2410_v19, %v2422_v22  ;;  %v290_v29 = vmul.f32 %v2415_v20, %v2422_v22  ;;  %5478 = vst [vmem:[#allocation37_spill] sm:$0xff] %v2564_v8 }
  0x17   :  { %v291_v11 = vmul.f32 %v2420_v21, %v2422_v22  ;;  %v292_v7 = vmul.f32 %v2429_v24, %v2422_v22  ;;  %v293_v23 = vmul.f32 %v2434_v25, %v2422_v22  ;;  %v294_v6 = vmul.f32 %v2439_v26, %v2422_v22  ;;  %v2577_v21 = vld [vmem:[%s5285_s0 + $0xd8] sm:$0xff] }
  0x18   :  { %v295_v28 = vmul.f32 %v2452_v31, %v2422_v22  ;;  %5479 = vst [vmem:[#allocation38_spill] sm:$0xff] %v2577_v21  ;;  %v296_v20 = vmul.f32 %v2457_v32, %v2422_v22  ;;  %v297_v24 = vmul.f32 %v2462_v33, %v2422_v22  ;;  %v298_v25 = vmul.f32 %v2478_v38, %v2422_v22 }
  0x19   :  { %v299_v26 = vmul.f32 %v2483_v39, %v2422_v22  ;;  %v300_v31 = vmul.f32 %v2488_v40, %v2422_v22  ;;  %v301_v19 = vmul.f32 %v2497_v45, %v2422_v22  ;;  %v302_v18 = vmul.f32 %v2502_v46, %v2422_v22 }
  0x1a   :  { %v303_v32 = vmul.f32 %v2507_v47, %v2422_v22  ;;  %v304_v33 = vmul.f32 %v2516_v52, %v2422_v22  ;;  %v305_v38 = vmul.f32 %v2521_v53, %v2422_v22  ;;  %v306_v39 = vmul.f32 %v2526_v54, %v2422_v22 }
  0x1b   :  { %v307_v40 = vmul.f32 %v2564_v8, %v2422_v22  ;;  %v308_v45 = vmul.f32 %v2577_v21, %v2422_v22  ;;  %v309_v46 = vadd.f32 %v283_v10, %v2465_v34  ;;  %v310_v17 = vadd.f32 %v284_v13, %v2468_v35 }
  0x1c   :  { %v311_v47 = vadd.f32 %v285_v14, %v2471_v36  ;;  %v312_v16 = vadd.f32 %v286_v3, %v230_v41  ;;  %v313_v52 = vadd.f32 %v287_v37, %v231_v42  ;;  %v314_v12 = vadd.f32 %v288_v30, %v232_v43 }
  0x1d   :  { %v315_v27 = vadd.f32 %v289_v15, %v233_v44  ;;  %v316_v53 = vadd.f32 %v290_v29, %v234_v48  ;;  %v317_v54 = vadd.f32 %v291_v11, %v235_v49  ;;  %v318_v8 = vadd.f32 %v292_v7, %v236_v50  ;;  %v5480_v29 = vld [vmem:[#allocation20_spill] sm:$0xff]  ;;  %v5481_v48 = vld [vmem:[#allocation9_spill] sm:$0xff]  ;;  %v5482_v7 = vld [vmem:[#allocation10_spill] sm:$0xff] }
  0x1e   :  { %v319_v21 = vadd.f32 %v293_v23, %v237_v51  ;;  %v320_v22 = vadd.f32 %v294_v6, %v238_v55  ;;  %v321_v10 = vadd.f32 %v295_v28, %v239_v56  ;;  %v322_v34 = vadd.f32 %v296_v20, %v240_v57  ;;  %v5483_v20 = vld [vmem:[#allocation11_spill] sm:$0xff]  ;;  %v5492_v51 = vld [vmem:[#allocation24_spill] sm:$0xff]  ;;  %v5493_v56 = vld [vmem:[#allocation25_spill] sm:$0xff] }
  0x1f   :  { %v323_v13 = vadd.f32 %v297_v24, %v241_v58  ;;  %v324_v35 = vadd.f32 %v298_v25, %v242_v59  ;;  %v325_v14 = vadd.f32 %v299_v26, %v243_v60  ;;  %v326_v36 = vadd.f32 %v300_v31, %v244_v61  ;;  %v5484_v24 = vld [vmem:[#allocation12_spill] sm:$0xff]  ;;  %v5486_v26 = vld [vmem:[#allocation14_spill] sm:$0xff]  ;;  %v5487_v31 = vld [vmem:[#allocation15_spill] sm:$0xff] }
  0x20   :  { %v327_v3 = vadd.f32 %v301_v19, %v245_v62  ;;  %v328_v41 = vadd.f32 %v302_v18, %v246_v63  ;;  %v329_v37 = vadd.f32 %v303_v32, %v247_v0  ;;  %v330_v42 = vadd.f32 %v304_v33, %v248_v1  ;;  %v5485_v18 = vld [vmem:[#allocation13_spill] sm:$0xff]  ;;  %v5491_v49 = vld [vmem:[#allocation19_spill] sm:$0xff]  ;;  %v5494_v58 = vld [vmem:[#allocation26_spill] sm:$0xff] }
  0x21   :  { %v331_v30 = vadd.f32 %v305_v38, %v249_v2  ;;  %v332_v43 = vadd.f32 %v306_v39, %v250_v4  ;;  %v333_v15 = vadd.f32 %v307_v40, %v251_v5  ;;  %v334_v44 = vadd.f32 %v308_v45, %v252_v9  ;;  %v5488_v33 = vld [vmem:[#allocation17_spill] sm:$0xff]  ;;  %v5489_v39 = vld [vmem:[#allocation18_spill] sm:$0xff]  ;;  %v2642_v60 = vld [vmem:[%s5285_s0 + $0xe8] sm:$0xff] }
  0x22   :  { %v339_v11 = vmul.f32 %v5481_v48, %v5480_v29  ;;  %v340_v6 = vmul.f32 %v5482_v7, %v5480_v29  ;;  %v341_v23 = vmul.f32 %v5483_v20, %v5480_v29  ;;  %v342_v25 = vmul.f32 %v5484_v24, %v5480_v29  ;;  %v2629_v45 = vld [vmem:[%s5285_s0 + $0xe0] sm:$0xff]  ;;  %5495 = vst [vmem:[#allocation39_spill] sm:$0xff] %v2642_v60  ;;  %v5496_v61 = vld [vmem:[#allocation28_spill] sm:$0xff]  ;;  %v5497_v63 = vld [vmem:[#allocation29_spill] sm:$0xff] }
  0x23   :  { %v343_v19 = vmul.f32 %v5485_v18, %v5480_v29  ;;  %v344_v28 = vmul.f32 %v5486_v26, %v5480_v29  ;;  %v345_v32 = vmul.f32 %v5487_v31, %v5480_v29  ;;  %v346_v38 = vmul.f32 %v5488_v33, %v5480_v29  ;;  %5490 = vst [vmem:[#allocation20_spill] sm:$0xff] %v2629_v45  ;;  %v5498_v1 = vld [vmem:[#allocation30_spill] sm:$0xff]  ;;  %v5499_v4 = vld [vmem:[#allocation31_spill] sm:$0xff]  ;;  %v5500_v9 = vld [vmem:[#allocation32_spill] sm:$0xff] }
  0x24   :  { %v347_v40 = vmul.f32 %v5489_v39, %v5480_v29  ;;  %v348_v50 = vmul.f32 %v5491_v49, %v5480_v29  ;;  %v349_v55 = vmul.f32 %v5492_v51, %v5480_v29  ;;  %v350_v57 = vmul.f32 %v5493_v56, %v5480_v29  ;;  %v5501_v48 = vld [vmem:[#allocation33_spill] sm:$0xff]  ;;  %v5502_v56 = vld [vmem:[#allocation34_spill] sm:$0xff] }
  0x25   :  { %v351_v59 = vmul.f32 %v5494_v58, %v5480_v29  ;;  %v352_v62 = vmul.f32 %v5496_v61, %v5480_v29  ;;  %v353_v0 = vmul.f32 %v5497_v63, %v5480_v29  ;;  %v354_v2 = vmul.f32 %v5498_v1, %v5480_v29  ;;  %v5503_v61 = vld [vmem:[#allocation35_spill] sm:$0xff]  ;;  %v5504_v63 = vld [vmem:[#allocation36_spill] sm:$0xff]  ;;  %v5505_v1 = vld [vmem:[#allocation37_spill] sm:$0xff] }
  0x26   :  { %v355_v5 = vmul.f32 %v5499_v4, %v5480_v29  ;;  %v356_v7 = vmul.f32 %v5500_v9, %v5480_v29  ;;  %v357_v58 = vmul.f32 %v5501_v48, %v5480_v29  ;;  %v358_v51 = vmul.f32 %v5502_v56, %v5480_v29  ;;  %v5506_v4 = vld [vmem:[#allocation38_spill] sm:$0xff] }
  0x27   :  { %v359_v49 = vmul.f32 %v5503_v61, %v5480_v29  ;;  %v360_v39 = vmul.f32 %v5504_v63, %v5480_v29  ;;  %v361_v33 = vmul.f32 %v5505_v1, %v5480_v29  ;;  %v362_v31 = vmul.f32 %v5506_v4, %v5480_v29 }
  0x28   :  { %v363_v9 = vmul.f32 %v2629_v45, %v5480_v29  ;;  %v364_v48 = vmul.f32 %v2642_v60, %v5480_v29  ;;  %v365_v26 = vadd.f32 %v339_v11, %v309_v46  ;;  %v366_v56 = vadd.f32 %v340_v6, %v310_v17 }
  0x29   :  { %v367_v18 = vadd.f32 %v341_v23, %v311_v47  ;;  %v368_v24 = vadd.f32 %v342_v25, %v312_v16  ;;  %v369_v61 = vadd.f32 %v343_v19, %v313_v52  ;;  %v370_v20 = vadd.f32 %v344_v28, %v314_v12 }
  0x2a   :  { %v371_v63 = vadd.f32 %v345_v32, %v315_v27  ;;  %v372_v1 = vadd.f32 %v346_v38, %v316_v53  ;;  %v373_v4 = vadd.f32 %v347_v40, %v317_v54  ;;  %v374_v45 = vadd.f32 %v348_v50, %v318_v8  ;;  %v5507_v38 = vld [vmem:[#allocation21_spill] sm:$0xff]  ;;  %v5508_v53 = vld [vmem:[#allocation11_spill] sm:$0xff]  ;;  %v5509_v8 = vld [vmem:[#allocation12_spill] sm:$0xff] }
  0x2b   :  { %v375_v29 = vadd.f32 %v349_v55, %v319_v21  ;;  %v376_v60 = vadd.f32 %v350_v57, %v320_v22  ;;  %v377_v11 = vadd.f32 %v351_v59, %v321_v10  ;;  %v378_v46 = vadd.f32 %v352_v62, %v322_v34  ;;  %v5510_v22 = vld [vmem:[#allocation13_spill] sm:$0xff]  ;;  %v5511_v34 = vld [vmem:[#allocation14_spill] sm:$0xff]  ;;  %v5525_v62 = vld [vmem:[#allocation32_spill] sm:$0xff] }
  0x2c   :  { %v379_v6 = vadd.f32 %v353_v0, %v323_v13  ;;  %v380_v17 = vadd.f32 %v354_v2, %v324_v35  ;;  %v381_v23 = vadd.f32 %v355_v5, %v325_v14  ;;  %v382_v47 = vadd.f32 %v356_v7, %v326_v36  ;;  %v5512_v35 = vld [vmem:[#allocation15_spill] sm:$0xff]  ;;  %v5513_v36 = vld [vmem:[#allocation17_spill] sm:$0xff]  ;;  %v5523_v55 = vld [vmem:[#allocation30_spill] sm:$0xff] }
  0x2d   :  { %v383_v16 = vadd.f32 %v357_v58, %v327_v3  ;;  %v384_v25 = vadd.f32 %v358_v51, %v328_v41  ;;  %v385_v19 = vadd.f32 %v359_v49, %v329_v37  ;;  %v386_v52 = vadd.f32 %v360_v39, %v330_v42  ;;  %v5514_v41 = vld [vmem:[#allocation18_spill] sm:$0xff]  ;;  %v5515_v42 = vld [vmem:[#allocation19_spill] sm:$0xff]  ;;  %v5520_v39 = vld [vmem:[#allocation28_spill] sm:$0xff] }
  0x2e   :  { %v387_v12 = vadd.f32 %v361_v33, %v331_v30  ;;  %v388_v28 = vadd.f32 %v362_v31, %v332_v43  ;;  %v389_v27 = vadd.f32 %v363_v9, %v333_v15  ;;  %v390_v32 = vadd.f32 %v364_v48, %v334_v44  ;;  %v5516_v43 = vld [vmem:[#allocation24_spill] sm:$0xff]  ;;  %v5518_v48 = vld [vmem:[#allocation25_spill] sm:$0xff]  ;;  %v5519_v31 = vld [vmem:[#allocation26_spill] sm:$0xff] }
  0x2f   :  { %v395_v54 = vmul.f32 %v5508_v53, %v5507_v38  ;;  %v396_v21 = vmul.f32 %v5509_v8, %v5507_v38  ;;  %v397_v10 = vmul.f32 %v5510_v22, %v5507_v38  ;;  %v398_v13 = vmul.f32 %v5511_v34, %v5507_v38  ;;  %v2691_v44 = vld [vmem:[%s5285_s0 + $0xf0] sm:$0xff]  ;;  %v5521_v49 = vld [vmem:[#allocation29_spill] sm:$0xff]  ;;  %v5524_v58 = vld [vmem:[#allocation31_spill] sm:$0xff] }
  0x30   :  { %v399_v14 = vmul.f32 %v5512_v35, %v5507_v38  ;;  %v400_v3 = vmul.f32 %v5513_v36, %v5507_v38  ;;  %v401_v37 = vmul.f32 %v5514_v41, %v5507_v38  ;;  %v402_v30 = vmul.f32 %v5515_v42, %v5507_v38  ;;  %5517 = vst [vmem:[#allocation21_spill] sm:$0xff] %v2691_v44  ;;  %v2704_v51 = vld [vmem:[%s5285_s0 + $0xf8] sm:$0xff]  ;;  %v5527_v9 = vld [vmem:[#allocation34_spill] sm:$0xff] }
  0x31   :  { %v403_v15 = vmul.f32 %v5516_v43, %v5507_v38  ;;  %v404_v7 = vmul.f32 %v5518_v48, %v5507_v38  ;;  %v405_v33 = vmul.f32 %v5519_v31, %v5507_v38  ;;  %v406_v40 = vmul.f32 %v5520_v39, %v5507_v38  ;;  %5522 = vst [vmem:[#allocation40_spill] sm:$0xff] %v2704_v51  ;;  %v5526_v2 = vld [vmem:[#allocation33_spill] sm:$0xff]  ;;  %v5528_v39 = vld [vmem:[#allocation35_spill] sm:$0xff]  ;;  %v5529_v48 = vld [vmem:[#allocation36_spill] sm:$0xff] }
  0x32   :  { %v407_v50 = vmul.f32 %v5521_v49, %v5507_v38  ;;  %v408_v57 = vmul.f32 %v5523_v55, %v5507_v38  ;;  %v409_v59 = vmul.f32 %v5524_v58, %v5507_v38  ;;  %v410_v0 = vmul.f32 %v5525_v62, %v5507_v38  ;;  %v5530_v55 = vld [vmem:[#allocation37_spill] sm:$0xff]  ;;  %v5531_v58 = vld [vmem:[#allocation38_spill] sm:$0xff]  ;;  %v5532_v62 = vld [vmem:[#allocation20_spill] sm:$0xff] }
  0x33   :  { %v411_v5 = vmul.f32 %v5526_v2, %v5507_v38  ;;  %v412_v49 = vmul.f32 %v5527_v9, %v5507_v38  ;;  %v413_v31 = vmul.f32 %v5528_v39, %v5507_v38  ;;  %v414_v43 = vmul.f32 %v5529_v48, %v5507_v38  ;;  %v5533_v2 = vld [vmem:[#allocation39_spill] sm:$0xff] }
  0x34   :  { %v415_v42 = vmul.f32 %v5530_v55, %v5507_v38  ;;  %v416_v41 = vmul.f32 %v5531_v58, %v5507_v38  ;;  %v417_v36 = vmul.f32 %v5532_v62, %v5507_v38  ;;  %v418_v35 = vmul.f32 %v5533_v2, %v5507_v38 }
  0x35   :  { %v419_v9 = vmul.f32 %v2691_v44, %v5507_v38  ;;  %v420_v39 = vmul.f32 %v2704_v51, %v5507_v38  ;;  %v2732_v34 = vadd.f32 %v395_v54, %v365_v26  ;;  %v2734_v48 = vadd.f32 %v396_v21, %v366_v56 }
  0x36   :  { %v2736_v55 = vadd.f32 %v397_v10, %v367_v18  ;;  %v2738_v22 = vadd.f32 %v398_v13, %v368_v24  ;;  %v2740_v58 = vadd.f32 %v399_v14, %v369_v61  ;;  %v2742_v62 = vadd.f32 %v400_v3, %v370_v20  ;;  %v5543_v10 = vld [vmem:[#allocation11_spill] sm:$0xff] }
  0x37   :  { %v2744_v8 = vadd.f32 %v401_v37, %v371_v63  ;;  %v2746_v2 = vadd.f32 %v402_v30, %v372_v1  ;;  %v2748_v44 = vadd.f32 %v403_v15, %v373_v4  ;;  %v2750_v53 = vadd.f32 %v404_v7, %v374_v45  ;;  %v5549_v7 = vld [vmem:[#allocation18_spill] sm:$0xff] }
  0x38   :  { %v2752_v26 = vadd.f32 %v405_v33, %v375_v29  ;;  %v2754_v56 = vadd.f32 %v406_v40, %v376_v60  ;;  %v2756_v18 = vadd.f32 %v407_v50, %v377_v11  ;;  %v2758_v24 = vadd.f32 %v408_v57, %v378_v46  ;;  %v5550_v33 = vld [vmem:[#allocation19_spill] sm:$0xff]  ;;  %v5551_v40 = vld [vmem:[#allocation24_spill] sm:$0xff]  ;;  %v5552_v50 = vld [vmem:[#allocation25_spill] sm:$0xff] }
  0x39   :  { %v2760_v61 = vadd.f32 %v409_v59, %v379_v6  ;;  %v2762_v20 = vadd.f32 %v410_v0, %v380_v17  ;;  %v2764_v63 = vadd.f32 %v411_v5, %v381_v23  ;;  %v2766_v1 = vadd.f32 %v412_v49, %v382_v47  ;;  %v5536_v23 = vld [vmem:[#allocation5_spill] sm:$0xff]  ;;  %v5537_v47 = vld [vmem:[#allocation16_spill] sm:$0xff]  ;;  %v5553_v59 = vld [vmem:[#allocation26_spill] sm:$0xff] }
  0x3a   :  { %v2768_v4 = vadd.f32 %v413_v31, %v383_v16  ;;  %v2770_v45 = vadd.f32 %v414_v43, %v384_v25  ;;  %v2772_v29 = vadd.f32 %v415_v42, %v385_v19  ;;  %v2774_v60 = vadd.f32 %v416_v41, %v386_v52  ;;  %v5538_v16 = vld [vmem:[#allocation6_spill] sm:$0xff]  ;;  %v5539_v25 = vld [vmem:[#allocation7_spill] sm:$0xff]  ;;  %v5540_v52 = vld [vmem:[#allocation8_spill] sm:$0xff] }
  0x3b   :  { %v2776_v11 = vadd.f32 %v417_v36, %v387_v12  ;;  %v2778_v46 = vadd.f32 %v418_v35, %v388_v28  ;;  %v2780_v6 = vadd.f32 %v419_v9, %v389_v27  ;;  %v2782_v17 = vadd.f32 %v420_v39, %v390_v32  ;;  %v5541_v28 = vld [vmem:[#allocation9_spill] sm:$0xff]  ;;  %v5542_v32 = vld [vmem:[#allocation10_spill] sm:$0xff]  ;;  %v5544_v35 = vld [vmem:[#allocation12_spill] sm:$0xff] }
  0x3c   :  { %v451_v38 = vmul.f32 %v5537_v47, %v5536_v23  ;;  %v2788_v54 = vmul.f32 %v5538_v16, %v5537_v47  ;;  %v453_v19 = vmul.f32 %v5539_v25, %v5537_v47  ;;  %v2794_v12 = vmul.f32 %v5540_v52, %v5537_v47  ;;  %v5545_v36 = vld [vmem:[#allocation13_spill] sm:$0xff]  ;;  %v5546_v41 = vld [vmem:[#allocation14_spill] sm:$0xff]  ;;  %v5547_v42 = vld [vmem:[#allocation15_spill] sm:$0xff] }
  0x3d   :  { %5534 = vst [vmem:[#allocation41_spill] sm:$0xff] %v2780_v6  ;;  %5535 = vst [vmem:[#allocation42_spill] sm:$0xff] %v2782_v17  ;;  %v455_v27 = vmul.f32 %v5541_v28, %v5537_v47  ;;  %v2800_v21 = vmul.f32 %v5542_v32, %v5537_v47  ;;  %v457_v13 = vmul.f32 %v5543_v10, %v5537_v47  ;;  %v5548_v43 = vld [vmem:[#allocation17_spill] sm:$0xff]  ;;  %v5554_v5 = vld [vmem:[#allocation28_spill] sm:$0xff] }
  0x3e   :  { %v2806_v14 = vmul.f32 %v5544_v35, %v5537_v47  ;;  %v459_v3 = vmul.f32 %v5545_v36, %v5537_v47  ;;  %v2812_v37 = vmul.f32 %v5546_v41, %v5537_v47  ;;  %v461_v30 = vmul.f32 %v5547_v42, %v5537_v47  ;;  %v5555_v23 = vld [vmem:[#allocation29_spill] sm:$0xff]  ;;  %v5558_v42 = vld [vmem:[#allocation32_spill] sm:$0xff]  ;;  %v5560_v36 = vld [vmem:[#allocation34_spill] sm:$0xff] }
  0x3f   :  { %v2818_v15 = vmul.f32 %v5548_v43, %v5537_v47  ;;  %v463_v31 = vmul.f32 %v5549_v7, %v5537_v47  ;;  %v2824_v39 = vmul.f32 %v5550_v33, %v5537_v47  ;;  %v465_v49 = vmul.f32 %v5551_v40, %v5537_v47  ;;  %v5556_v7 = vld [vmem:[#allocation30_spill] sm:$0xff] }
  0x40   :  { %v2830_v57 = vmul.f32 %v5552_v50, %v5537_v47  ;;  %v467_v0 = vmul.f32 %v5553_v59, %v5537_v47  ;;  %v2836_v9 = vmul.f32 %v5554_v5, %v5537_v47  ;;  %v469_v16 = vmul.f32 %v5555_v23, %v5537_v47  ;;  %v5557_v50 = vld [vmem:[#allocation31_spill] sm:$0xff]  ;;  %v5559_v5 = vld [vmem:[#allocation33_spill] sm:$0xff] }
  0x41   :  { %v504_v51 = vrot.slane %v451_v38, 1  ;;  %v505_v33 = vrot.slane %v2788_v54, 1  ;;  %v2843_v40 = vmul.f32 %v5556_v7, %v5537_v47  ;;  %v471_v43 = vmul.f32 %v5557_v50, %v5537_v47  ;;  %v5561_v38 = vld [vmem:[#allocation35_spill] sm:$0xff]  ;;  %v5562_v7 = vld [vmem:[#allocation36_spill] sm:$0xff] }
  0x42   :  { %v2849_v59 = vmul.f32 %v5558_v42, %v5537_v47  ;;  %v473_v41 = vmul.f32 %v5559_v5, %v5537_v47  ;;  %v2855_v23 = vmul.f32 %v5560_v36, %v5537_v47  ;;  %v475_v54 = vmul.f32 %v5561_v38, %v5537_v47 }
  0x43   :  { %v2861_v35 = vmul.f32 %v5562_v7, %v5537_v47  ;;  %v507_v10 = vrot.slane %v453_v19, 1  ;;  %v508_v50 = vrot.slane %v2794_v12, 1  ;;  %v510_v32 = vrot.slane %v455_v27, 1 }
  0x44   :  { %v511_v42 = vrot.slane %v2800_v21, 1  ;;  %v513_v28 = vrot.slane %v457_v13, 1  ;;  %v506_v5 = vsel %vm503_vm0, %v504_v51, %v505_v33  ;;  %v514_v52 = vrot.slane %v2806_v14, 1 }
  0x45   :  { %v516_v36 = vrot.slane %v459_v3, 1  ;;  %v517_v25 = vrot.slane %v2812_v37, 1  ;;  %v519_v17 = vrot.slane %v461_v30, 1  ;;  %v520_v38 = vrot.slane %v2818_v15, 1 }
  0x46   :  { %v522_v6 = vrot.slane %v463_v31, 1  ;;  %v523_v47 = vrot.slane %v2824_v39, 1  ;;  %v525_v19 = vrot.slane %v465_v49, 1  ;;  %v526_v12 = vrot.slane %v2830_v57, 1 }
  0x47   :  { %v528_v27 = vrot.slane %v467_v0, 1  ;;  %v529_v21 = vrot.slane %v2836_v9, 1  ;;  %v531_v13 = vrot.slane %v469_v16, 1  ;;  %v532_v51 = vrot.slane %v2843_v40, 1  ;;  %v5572_v16 = vld [vmem:[#allocation11_spill] sm:$0xff] }
  0x48   :  { %v534_v7 = vrot.slane %v471_v43, 1  ;;  %v535_v14 = vrot.slane %v2849_v59, 1  ;;  %v537_v3 = vrot.slane %v473_v41, 1  ;;  %v538_v37 = vrot.slane %v2855_v23, 1  ;;  %v5571_v23 = vld [vmem:[#allocation10_spill] sm:$0xff] }
  0x49   :  { %v540_v30 = vrot.slane %v475_v54, 1  ;;  %v541_v15 = vrot.slane %v2861_v35, 1  ;;  %v509_v31 = vsel %vm503_vm0, %v507_v10, %v508_v50  ;;  %v512_v39 = vsel %vm503_vm0, %v510_v32, %v511_v42  ;;  %v5573_v54 = vld [vmem:[#allocation12_spill] sm:$0xff] }
  0x4a   :  { %v515_v49 = vsel %vm503_vm0, %v513_v28, %v514_v52  ;;  %v518_v57 = vsel %vm503_vm0, %v516_v36, %v517_v25  ;;  %v521_v0 = vsel %vm503_vm0, %v519_v17, %v520_v38  ;;  %v524_v43 = vsel %vm503_vm0, %v522_v6, %v523_v47 }
  0x4b   :  { %v527_v40 = vsel %vm503_vm0, %v525_v19, %v526_v12  ;;  %v530_v41 = vsel %vm503_vm0, %v528_v27, %v529_v21  ;;  %v533_v59 = vsel %vm503_vm0, %v531_v13, %v532_v51  ;;  %v536_v35 = vsel %vm503_vm0, %v534_v7, %v535_v14  ;;  %v5574_v19 = vld [vmem:[#allocation13_spill] sm:$0xff]  ;;  %v5575_v27 = vld [vmem:[#allocation14_spill] sm:$0xff]  ;;  %v5576_v13 = vld [vmem:[#allocation15_spill] sm:$0xff] }
  0x4c   :  { %v2887_v10 = vadd.f32 %v506_v5, %v2732_v34  ;;  %v2890_v32 = vadd.f32 %v505_v33, %v2734_v48  ;;  %v539_v28 = vsel %vm503_vm0, %v537_v3, %v538_v37  ;;  %v542_v17 = vsel %vm503_vm0, %v540_v30, %v541_v15 }
  0x4d   :  { %v2895_v6 = vadd.f32 %v509_v31, %v2736_v55  ;;  %v2898_v36 = vadd.f32 %v508_v50, %v2738_v22  ;;  %v2901_v9 = vadd.f32 %v512_v39, %v2740_v58  ;;  %v2904_v7 = vadd.f32 %v511_v42, %v2742_v62  ;;  %v5568_v42 = vld [vmem:[#allocation7_spill] sm:$0xff]  ;;  %v5580_v39 = vld [vmem:[#allocation24_spill] sm:$0xff] }
  0x4e   :  { %v2907_v34 = vadd.f32 %v515_v49, %v2744_v8  ;;  %v2910_v48 = vadd.f32 %v514_v52, %v2746_v2  ;;  %v2913_v33 = vadd.f32 %v518_v57, %v2748_v44  ;;  %v2916_v55 = vadd.f32 %v517_v25, %v2750_v53  ;;  %v5581_v57 = vld [vmem:[#allocation25_spill] sm:$0xff] }
  0x4f   :  { %v2919_v22 = vadd.f32 %v521_v0, %v2752_v26  ;;  %v2922_v58 = vadd.f32 %v520_v38, %v2754_v56  ;;  %v2925_v62 = vadd.f32 %v524_v43, %v2756_v18  ;;  %v2928_v8 = vadd.f32 %v523_v47, %v2758_v24  ;;  %v5582_v43 = vld [vmem:[#allocation26_spill] sm:$0xff] }
  0x50   :  { %v2931_v2 = vadd.f32 %v527_v40, %v2760_v61  ;;  %v2934_v44 = vadd.f32 %v526_v12, %v2762_v20  ;;  %v2937_v53 = vadd.f32 %v530_v41, %v2764_v63  ;;  %v2940_v26 = vadd.f32 %v529_v21, %v2766_v1  ;;  %v5563_v1 = vld [vmem:[#allocation41_spill] sm:$0xff]  ;;  %v5583_v41 = vld [vmem:[#allocation28_spill] sm:$0xff] }
  0x51   :  { %v2943_v56 = vadd.f32 %v533_v59, %v2768_v4  ;;  %v2946_v18 = vadd.f32 %v532_v51, %v2770_v45  ;;  %v2949_v24 = vadd.f32 %v536_v35, %v2772_v29  ;;  %v2952_v61 = vadd.f32 %v535_v14, %v2774_v60  ;;  %v5565_v4 = vld [vmem:[#allocation42_spill] sm:$0xff]  ;;  %v5569_v29 = vld [vmem:[#allocation8_spill] sm:$0xff]  ;;  %v5570_v60 = vld [vmem:[#allocation9_spill] sm:$0xff] }
  0x52   :  { %v2955_v20 = vadd.f32 %v539_v28, %v2776_v11  ;;  %v2958_v63 = vadd.f32 %v538_v37, %v2778_v46  ;;  %v2961_v25 = vadd.f32 %v542_v17, %v5563_v1  ;;  %v2964_v52 = vadd.f32 %v541_v15, %v5565_v4  ;;  %v5567_v45 = vld [vmem:[#allocation22_spill] sm:$0xff]  ;;  %v5577_v14 = vld [vmem:[#allocation17_spill] sm:$0xff]  ;;  %v5579_v15 = vld [vmem:[#allocation19_spill] sm:$0xff] }
  0x53   :  { %v599_v50 = vmul.f32 %v5568_v42, %v5567_v45  ;;  %v2970_v5 = vmul.f32 %v5569_v29, %v5567_v45  ;;  %v601_v11 = vmul.f32 %v5570_v60, %v5567_v45  ;;  %v2976_v46 = vmul.f32 %v5571_v23, %v5567_v45  ;;  %v5578_v37 = vld [vmem:[#allocation18_spill] sm:$0xff]  ;;  %v5584_v35 = vld [vmem:[#allocation29_spill] sm:$0xff]  ;;  %v5586_v4 = vld [vmem:[#allocation31_spill] sm:$0xff] }
  0x54   :  { %5564 = vst [vmem:[#allocation5_spill] sm:$0xff] %v2961_v25  ;;  %5566 = vst [vmem:[#allocation16_spill] sm:$0xff] %v2964_v52  ;;  %v603_v38 = vmul.f32 %v5572_v16, %v5567_v45  ;;  %v2982_v47 = vmul.f32 %v5573_v54, %v5567_v45  ;;  %v605_v12 = vmul.f32 %v5574_v19, %v5567_v45  ;;  %v5585_v17 = vld [vmem:[#allocation30_spill] sm:$0xff]  ;;  %v5587_v29 = vld [vmem:[#allocation32_spill] sm:$0xff] }
  0x55   :  { %v2988_v21 = vmul.f32 %v5575_v27, %v5567_v45  ;;  %v607_v51 = vmul.f32 %v5576_v13, %v5567_v45  ;;  %v2994_v3 = vmul.f32 %v5577_v14, %v5567_v45  ;;  %v609_v30 = vmul.f32 %v5578_v37, %v5567_v45 }
  0x56   :  { %v3000_v31 = vmul.f32 %v5579_v15, %v5567_v45  ;;  %v611_v49 = vmul.f32 %v5580_v39, %v5567_v45  ;;  %v3006_v0 = vmul.f32 %v5581_v57, %v5567_v45  ;;  %v613_v40 = vmul.f32 %v5582_v43, %v5567_v45  ;;  %v5588_v43 = vld [vmem:[#allocation33_spill] sm:$0xff] }
  0x57   :  { %v3012_v59 = vmul.f32 %v5583_v41, %v5567_v45  ;;  %v615_v28 = vmul.f32 %v5584_v35, %v5567_v45  ;;  %v3018_v1 = vmul.f32 %v5585_v17, %v5567_v45  ;;  %v617_v42 = vmul.f32 %v5586_v4, %v5567_v45  ;;  %v5589_v41 = vld [vmem:[#allocation34_spill] sm:$0xff]  ;;  %v5590_v35 = vld [vmem:[#allocation35_spill] sm:$0xff]  ;;  %v5591_v17 = vld [vmem:[#allocation36_spill] sm:$0xff] }
  0x58   :  { %v3024_v52 = vmul.f32 %v5587_v29, %v5567_v45  ;;  %v619_v57 = vmul.f32 %v5588_v43, %v5567_v45  ;;  %v3030_v39 = vmul.f32 %v5589_v41, %v5567_v45  ;;  %v621_v15 = vmul.f32 %v5590_v35, %v5567_v45  ;;  %v5592_v4 = vld [vmem:[#allocation37_spill] sm:$0xff]  ;;  %v5593_v29 = vld [vmem:[#allocation38_spill] sm:$0xff] }
  0x59   :  { %v3036_v37 = vmul.f32 %v5591_v17, %v5567_v45  ;;  %v623_v14 = vmul.f32 %v5592_v4, %v5567_v45  ;;  %v3042_v13 = vmul.f32 %v5593_v29, %v5567_v45  ;;  %v651_v27 = vrot.slane %v599_v50, 1 }
  0x5a   :  { %v652_v43 = vrot.slane %v2970_v5, 1  ;;  %v654_v19 = vrot.slane %v601_v11, 1  ;;  %v655_v41 = vrot.slane %v2976_v46, 1  ;;  %v657_v54 = vrot.slane %v603_v38, 1 }
  0x5b   :  { %v658_v35 = vrot.slane %v2982_v47, 1  ;;  %v660_v16 = vrot.slane %v605_v12, 1  ;;  %v661_v17 = vrot.slane %v2988_v21, 1  ;;  %v663_v23 = vrot.slane %v607_v51, 1 }
  0x5c   :  { %v664_v60 = vrot.slane %v2994_v3, 1  ;;  %v666_v4 = vrot.slane %v609_v30, 1  ;;  %v667_v25 = vrot.slane %v3000_v31, 1  ;;  %v669_v45 = vrot.slane %v611_v49, 1 }
  0x5d   :  { %v670_v50 = vrot.slane %v3006_v0, 1  ;;  %v672_v29 = vrot.slane %v613_v40, 1  ;;  %v673_v5 = vrot.slane %v3012_v59, 1  ;;  %v675_v11 = vrot.slane %v615_v28, 1 }
  0x5e   :  { %v676_v46 = vrot.slane %v3018_v1, 1  ;;  %v678_v38 = vrot.slane %v617_v42, 1  ;;  %v679_v47 = vrot.slane %v3024_v52, 1  ;;  %v681_v12 = vrot.slane %v619_v57, 1 }
  0x5f   :  { %v682_v21 = vrot.slane %v3030_v39, 1  ;;  %v684_v51 = vrot.slane %v621_v15, 1  ;;  %v685_v3 = vrot.slane %v3036_v37, 1  ;;  %v653_v30 = vsel %vm503_vm0, %v651_v27, %v652_v43 }
  0x60   :  { %v656_v31 = vsel %vm503_vm0, %v654_v19, %v655_v41  ;;  %v687_v49 = vrot.slane %v623_v14, 1  ;;  %v5356_v0 = vrot.slane %v3042_v13, 1  ;;  %v659_v40 = vsel %vm503_vm0, %v657_v54, %v658_v35 }
  0x61   :  { %v662_v59 = vsel %vm503_vm0, %v660_v16, %v661_v17  ;;  %v665_v28 = vsel %vm503_vm0, %v663_v23, %v664_v60  ;;  %v668_v52 = vsel %vm503_vm0, %v666_v4, %v667_v25  ;;  %v671_v39 = vsel %vm503_vm0, %v669_v45, %v670_v50  ;;  %v5603_v45 = vld [vmem:[#allocation14_spill] sm:$0xff] }
  0x62   :  { %v674_v15 = vsel %vm503_vm0, %v672_v29, %v673_v5  ;;  %v677_v37 = vsel %vm503_vm0, %v675_v11, %v676_v46  ;;  %v680_v27 = vsel %vm503_vm0, %v678_v38, %v679_v47  ;;  %v683_v19 = vsel %vm503_vm0, %v681_v12, %v682_v21 }
  0x63   :  { %v686_v14 = vsel %vm503_vm0, %v684_v51, %v685_v3  ;;  %v3070_v54 = vadd.f32 %v653_v30, %v2887_v10  ;;  %v3073_v16 = vadd.f32 %v652_v43, %v2890_v32  ;;  %v689_v23 = vsel %vm503_vm0, %v687_v49, %v5356_v0  ;;  %v5617_v0 = vld [vmem:[#allocation34_spill] sm:$0xff] }
  0x64   :  { %v3079_v57 = vadd.f32 %v656_v31, %v2895_v6  ;;  %v3082_v1 = vadd.f32 %v655_v41, %v2898_v36  ;;  %v3085_v4 = vadd.f32 %v659_v40, %v2901_v9  ;;  %v3088_v42 = vadd.f32 %v658_v35, %v2904_v7  ;;  %v5609_v31 = vld [vmem:[#allocation25_spill] sm:$0xff]  ;;  %v5610_v40 = vld [vmem:[#allocation26_spill] sm:$0xff] }
  0x65   :  { %v3091_v10 = vadd.f32 %v662_v59, %v2907_v34  ;;  %v3094_v32 = vadd.f32 %v661_v17, %v2910_v48  ;;  %v3097_v43 = vadd.f32 %v665_v28, %v2913_v33  ;;  %v3100_v6 = vadd.f32 %v664_v60, %v2916_v55  ;;  %v5598_v60 = vld [vmem:[#allocation9_spill] sm:$0xff]  ;;  %v5601_v17 = vld [vmem:[#allocation12_spill] sm:$0xff] }
  0x66   :  { %v3103_v36 = vadd.f32 %v668_v52, %v2919_v22  ;;  %v3106_v9 = vadd.f32 %v667_v25, %v2922_v58  ;;  %v3109_v7 = vadd.f32 %v671_v39, %v2925_v62  ;;  %v3112_v34 = vadd.f32 %v670_v50, %v2928_v8  ;;  %v5611_v28 = vld [vmem:[#allocation28_spill] sm:$0xff]  ;;  %v5612_v39 = vld [vmem:[#allocation29_spill] sm:$0xff] }
  0x67   :  { %v3115_v48 = vadd.f32 %v674_v15, %v2931_v2  ;;  %v3118_v33 = vadd.f32 %v673_v5, %v2934_v44  ;;  %v3121_v55 = vadd.f32 %v677_v37, %v2937_v53  ;;  %v3124_v22 = vadd.f32 %v676_v46, %v2940_v26  ;;  %v5595_v26 = vld [vmem:[#allocation5_spill] sm:$0xff]  ;;  %v5604_v5 = vld [vmem:[#allocation15_spill] sm:$0xff]  ;;  %v5613_v37 = vld [vmem:[#allocation30_spill] sm:$0xff] }
  0x68   :  { %v3127_v58 = vadd.f32 %v680_v27, %v2943_v56  ;;  %v3130_v62 = vadd.f32 %v679_v47, %v2946_v18  ;;  %v3133_v8 = vadd.f32 %v683_v19, %v2949_v24  ;;  %v3136_v2 = vadd.f32 %v682_v21, %v2952_v61  ;;  %v5597_v56 = vld [vmem:[#allocation23_spill] sm:$0xff]  ;;  %v5599_v18 = vld [vmem:[#allocation10_spill] sm:$0xff]  ;;  %v5605_v46 = vld [vmem:[#allocation17_spill] sm:$0xff] }
  0x69   :  { %v3139_v44 = vadd.f32 %v686_v14, %v2955_v20  ;;  %v3142_v53 = vadd.f32 %v685_v3, %v2958_v63  ;;  %v3145_v25 = vadd.f32 %v689_v23, %v5595_v26  ;;  %v746_v41 = vmul.f32 %v5598_v60, %v5597_v56  ;;  %v5600_v24 = vld [vmem:[#allocation11_spill] sm:$0xff]  ;;  %v5602_v63 = vld [vmem:[#allocation13_spill] sm:$0xff]  ;;  %v5606_v47 = vld [vmem:[#allocation18_spill] sm:$0xff] }
  0x6a   :  { %v3151_v35 = vmul.f32 %v5599_v18, %v5597_v56  ;;  %v748_v61 = vmul.f32 %v5600_v24, %v5597_v56  ;;  %v3157_v20 = vmul.f32 %v5601_v17, %v5597_v56  ;;  %v750_v29 = vmul.f32 %v5602_v63, %v5597_v56  ;;  %v5607_v21 = vld [vmem:[#allocation19_spill] sm:$0xff]  ;;  %v5608_v3 = vld [vmem:[#allocation24_spill] sm:$0xff]  ;;  %v5616_v60 = vld [vmem:[#allocation33_spill] sm:$0xff] }
  0x6b   :  { %5594 = vst [vmem:[#allocation6_spill] sm:$0xff] %v3142_v53  ;;  %5596 = vst [vmem:[#allocation41_spill] sm:$0xff] %v3145_v25  ;;  %v3163_v50 = vmul.f32 %v5603_v45, %v5597_v56  ;;  %v752_v11 = vmul.f32 %v5604_v5, %v5597_v56  ;;  %v3169_v38 = vmul.f32 %v5605_v46, %v5597_v56  ;;  %v5614_v19 = vld [vmem:[#allocation31_spill] sm:$0xff]  ;;  %v5615_v23 = vld [vmem:[#allocation32_spill] sm:$0xff]  ;;  %v798_v5 = vrot.slane %v746_v41, 1 }
  0x6c   :  { %v754_v12 = vmul.f32 %v5606_v47, %v5597_v56  ;;  %v3175_v51 = vmul.f32 %v5607_v21, %v5597_v56  ;;  %v756_v30 = vmul.f32 %v5608_v3, %v5597_v56  ;;  %v3181_v49 = vmul.f32 %v5609_v31, %v5597_v56 }
  0x6d   :  { %v758_v59 = vmul.f32 %v5610_v40, %v5597_v56  ;;  %v3187_v52 = vmul.f32 %v5611_v28, %v5597_v56  ;;  %v760_v15 = vmul.f32 %v5612_v39, %v5597_v56  ;;  %v3193_v27 = vmul.f32 %v5613_v37, %v5597_v56  ;;  %v5618_v39 = vld [vmem:[#allocation35_spill] sm:$0xff]  ;;  %v5619_v37 = vld [vmem:[#allocation36_spill] sm:$0xff] }
  0x6e   :  { %v762_v14 = vmul.f32 %v5614_v19, %v5597_v56  ;;  %v3199_v26 = vmul.f32 %v5615_v23, %v5597_v56  ;;  %v764_v18 = vmul.f32 %v5616_v60, %v5597_v56  ;;  %v3205_v28 = vmul.f32 %v5617_v0, %v5597_v56  ;;  %v5620_v19 = vld [vmem:[#allocation37_spill] sm:$0xff]  ;;  %v5621_v23 = vld [vmem:[#allocation38_spill] sm:$0xff]  ;;  %v5622_v60 = vld [vmem:[#allocation20_spill] sm:$0xff] }
  0x6f   :  { %v766_v40 = vmul.f32 %v5618_v39, %v5597_v56  ;;  %v3211_v31 = vmul.f32 %v5619_v37, %v5597_v56  ;;  %v768_v3 = vmul.f32 %v5620_v19, %v5597_v56  ;;  %v3217_v21 = vmul.f32 %v5621_v23, %v5597_v56  ;;  %v5623_v0 = vld [vmem:[#allocation39_spill] sm:$0xff] }
  0x70   :  { %v770_v47 = vmul.f32 %v5622_v60, %v5597_v56  ;;  %v3223_v46 = vmul.f32 %v5623_v0, %v5597_v56  ;;  %v799_v39 = vrot.slane %v3151_v35, 1  ;;  %v801_v45 = vrot.slane %v748_v61, 1 }
  0x71   :  { %v802_v37 = vrot.slane %v3157_v20, 1  ;;  %v804_v63 = vrot.slane %v750_v29, 1  ;;  %v805_v19 = vrot.slane %v3163_v50, 1  ;;  %v807_v17 = vrot.slane %v752_v11, 1 }
  0x72   :  { %v808_v23 = vrot.slane %v3169_v38, 1  ;;  %v810_v24 = vrot.slane %v754_v12, 1  ;;  %v811_v25 = vrot.slane %v3175_v51, 1  ;;  %v813_v60 = vrot.slane %v756_v30, 1  ;;  %v5624_v12 = vld [vmem:[#allocation16_spill] sm:$0xff] }
  0x73   :  { %v814_v53 = vrot.slane %v3181_v49, 1  ;;  %v816_v56 = vrot.slane %v758_v59, 1  ;;  %v817_v41 = vrot.slane %v3187_v52, 1  ;;  %v819_v0 = vrot.slane %v760_v15, 1 }
  0x74   :  { %v820_v35 = vrot.slane %v3193_v27, 1  ;;  %v822_v61 = vrot.slane %v762_v14, 1  ;;  %v823_v20 = vrot.slane %v3199_v26, 1  ;;  %v825_v29 = vrot.slane %v764_v18, 1 }
  0x75   :  { %v826_v50 = vrot.slane %v3205_v28, 1  ;;  %v828_v11 = vrot.slane %v766_v40, 1  ;;  %v829_v38 = vrot.slane %v3211_v31, 1  ;;  %v5625_v51 = vrot.slane %v3042_v13, 1 }
  0x76   :  { %v800_v49 = vsel %vm503_vm0, %v798_v5, %v799_v39  ;;  %v831_v59 = vrot.slane %v768_v3, 1  ;;  %v832_v52 = vrot.slane %v3217_v21, 1  ;;  %v803_v15 = vsel %vm503_vm0, %v801_v45, %v802_v37 }
  0x77   :  { %v741_v30 = vadd.f32 %v5625_v51, %v5624_v12  ;;  %v806_v27 = vsel %vm503_vm0, %v804_v63, %v805_v19  ;;  %v834_v14 = vrot.slane %v770_v47, 1  ;;  %v835_v26 = vrot.slane %v3223_v46, 1  ;;  %v5639_v51 = vld [vmem:[#allocation24_spill] sm:$0xff] }
  0x78   :  { %v809_v40 = vsel %vm503_vm0, %v807_v17, %v808_v23  ;;  %v812_v31 = vsel %vm503_vm0, %v810_v24, %v811_v25  ;;  %v815_v28 = vsel %vm503_vm0, %v813_v60, %v814_v53  ;;  %v818_v13 = vsel %vm503_vm0, %v816_v56, %v817_v41 }
  0x79   :  { %v821_v5 = vsel %vm503_vm0, %v819_v0, %v820_v35  ;;  %v824_v3 = vsel %vm503_vm0, %v822_v61, %v823_v20  ;;  %v827_v21 = vsel %vm503_vm0, %v825_v29, %v826_v50  ;;  %v830_v45 = vsel %vm503_vm0, %v828_v11, %v829_v38 }
  0x7a   :  { %v833_v63 = vsel %vm503_vm0, %v831_v59, %v832_v52  ;;  %v3254_v46 = vadd.f32 %v800_v49, %v3070_v54  ;;  %v3257_v17 = vadd.f32 %v799_v39, %v3073_v16  ;;  %v3260_v24 = vadd.f32 %v803_v15, %v3079_v57  ;;  %v5640_v49 = vld [vmem:[#allocation25_spill] sm:$0xff] }
  0x7b   :  { %v836_v47 = vsel %vm503_vm0, %v834_v14, %v835_v26  ;;  %v3264_v0 = vadd.f32 %v802_v37, %v3082_v1  ;;  %v3267_v60 = vadd.f32 %v806_v27, %v3085_v4  ;;  %v3270_v18 = vadd.f32 %v805_v19, %v3088_v42  ;;  %v5630_v37 = vld [vmem:[#allocation27_spill] sm:$0xff]  ;;  %v5642_v27 = vld [vmem:[#allocation28_spill] sm:$0xff] }
  0x7c   :  { %v3273_v54 = vadd.f32 %v809_v40, %v3091_v10  ;;  %v3276_v16 = vadd.f32 %v808_v23, %v3094_v32  ;;  %v3279_v57 = vadd.f32 %v812_v31, %v3097_v43  ;;  %v3282_v39 = vadd.f32 %v811_v25, %v3100_v6  ;;  %v5644_v31 = vld [vmem:[#allocation30_spill] sm:$0xff] }
  0x7d   :  { %v3285_v1 = vadd.f32 %v815_v28, %v3103_v36  ;;  %v3288_v4 = vadd.f32 %v814_v53, %v3106_v9  ;;  %v3291_v42 = vadd.f32 %v818_v13, %v3109_v7  ;;  %v3294_v10 = vadd.f32 %v817_v41, %v3112_v34  ;;  %v5645_v13 = vld [vmem:[#allocation31_spill] sm:$0xff] }
  0x7e   :  { %v3297_v32 = vadd.f32 %v821_v5, %v3115_v48  ;;  %v3300_v43 = vadd.f32 %v820_v35, %v3118_v33  ;;  %v3303_v6 = vadd.f32 %v824_v3, %v3121_v55  ;;  %v3306_v36 = vadd.f32 %v823_v20, %v3124_v22  ;;  %v5626_v55 = vld [vmem:[#allocation6_spill] sm:$0xff]  ;;  %v5627_v22 = vld [vmem:[#allocation41_spill] sm:$0xff]  ;;  %v5635_v35 = vld [vmem:[#allocation15_spill] sm:$0xff] }
  0x7f   :  { %v3309_v9 = vadd.f32 %v827_v21, %v3127_v58  ;;  %v3312_v7 = vadd.f32 %v826_v50, %v3130_v62  ;;  %v3315_v34 = vadd.f32 %v830_v45, %v3133_v8  ;;  %v3318_v48 = vadd.f32 %v829_v38, %v3136_v2  ;;  %v5631_v62 = vld [vmem:[#allocation11_spill] sm:$0xff]  ;;  %v5632_v8 = vld [vmem:[#allocation12_spill] sm:$0xff]  ;;  %v5633_v2 = vld [vmem:[#allocation13_spill] sm:$0xff] }
  0x80   :  { %v3321_v33 = vadd.f32 %v833_v63, %v3139_v44  ;;  %v3324_v53 = vadd.f32 %v832_v52, %v5626_v55  ;;  %v3327_v25 = vadd.f32 %v836_v47, %v5627_v22  ;;  %v3329_v58 = vadd.f32 %v835_v26, %v741_v30  ;;  %v5634_v44 = vld [vmem:[#allocation14_spill] sm:$0xff]  ;;  %v5636_v20 = vld [vmem:[#allocation17_spill] sm:$0xff]  ;;  %v5638_v38 = vld [vmem:[#allocation19_spill] sm:$0xff] }
  0x81   :  { %v893_v19 = vmul.f32 %v5631_v62, %v5630_v37  ;;  %v3335_v23 = vmul.f32 %v5632_v8, %v5630_v37  ;;  %v895_v56 = vmul.f32 %v5633_v2, %v5630_v37  ;;  %v3341_v41 = vmul.f32 %v5634_v44, %v5630_v37  ;;  %v5637_v50 = vld [vmem:[#allocation18_spill] sm:$0xff]  ;;  %v5643_v26 = vld [vmem:[#allocation29_spill] sm:$0xff]  ;;  %v5646_v3 = vld [vmem:[#allocation32_spill] sm:$0xff] }
  0x82   :  { %5628 = vst [vmem:[#allocation42_spill] sm:$0xff] %v3327_v25  ;;  %5629 = vst [vmem:[#allocation22_spill] sm:$0xff] %v3329_v58  ;;  %v897_v61 = vmul.f32 %v5635_v35, %v5630_v37  ;;  %v3347_v29 = vmul.f32 %v5636_v20, %v5630_v37  ;;  %v899_v11 = vmul.f32 %v5637_v50, %v5630_v37  ;;  %v5641_v52 = vld [vmem:[#allocation26_spill] sm:$0xff]  ;;  %v5647_v45 = vld [vmem:[#allocation33_spill] sm:$0xff] }
  0x83   :  { %v3353_v12 = vmul.f32 %v5638_v38, %v5630_v37  ;;  %v901_v30 = vmul.f32 %v5639_v51, %v5630_v37  ;;  %v3359_v59 = vmul.f32 %v5640_v49, %v5630_v37  ;;  %v903_v15 = vmul.f32 %v5641_v52, %v5630_v37  ;;  %v5648_v47 = vld [vmem:[#allocation34_spill] sm:$0xff]  ;;  %v5649_v22 = vld [vmem:[#allocation35_spill] sm:$0xff]  ;;  %v5650_v8 = vld [vmem:[#allocation36_spill] sm:$0xff] }
  0x84   :  { %v3365_v14 = vmul.f32 %v5642_v27, %v5630_v37  ;;  %v905_v40 = vmul.f32 %v5643_v26, %v5630_v37  ;;  %v3371_v28 = vmul.f32 %v5644_v31, %v5630_v37  ;;  %v907_v5 = vmul.f32 %v5645_v13, %v5630_v37  ;;  %v5651_v44 = vld [vmem:[#allocation37_spill] sm:$0xff]  ;;  %v5652_v20 = vld [vmem:[#allocation38_spill] sm:$0xff]  ;;  %v5653_v38 = vld [vmem:[#allocation20_spill] sm:$0xff] }
  0x85   :  { %v3377_v21 = vmul.f32 %v5646_v3, %v5630_v37  ;;  %v909_v63 = vmul.f32 %v5647_v45, %v5630_v37  ;;  %v3383_v55 = vmul.f32 %v5648_v47, %v5630_v37  ;;  %v911_v62 = vmul.f32 %v5649_v22, %v5630_v37  ;;  %v5654_v49 = vld [vmem:[#allocation39_spill] sm:$0xff]  ;;  %v5655_v27 = vld [vmem:[#allocation21_spill] sm:$0xff]  ;;  %v5656_v31 = vld [vmem:[#allocation40_spill] sm:$0xff] }
  0x86   :  { %v3389_v2 = vmul.f32 %v5650_v8, %v5630_v37  ;;  %v913_v35 = vmul.f32 %v5651_v44, %v5630_v37  ;;  %v3395_v50 = vmul.f32 %v5652_v20, %v5630_v37  ;;  %v915_v51 = vmul.f32 %v5653_v38, %v5630_v37 }
  0x87   :  { %v3401_v52 = vmul.f32 %v5654_v49, %v5630_v37  ;;  %v917_v26 = vmul.f32 %v5655_v27, %v5630_v37  ;;  %v3407_v13 = vmul.f32 %v5656_v31, %v5630_v37  ;;  %v945_v3 = vrot.slane %v893_v19, 1 }
  0x88   :  { %v946_v45 = vrot.slane %v3335_v23, 1  ;;  %v948_v47 = vrot.slane %v895_v56, 1  ;;  %v949_v22 = vrot.slane %v3341_v41, 1  ;;  %v951_v8 = vrot.slane %v897_v61, 1 }
  0x89   :  { %v952_v44 = vrot.slane %v3347_v29, 1  ;;  %v954_v20 = vrot.slane %v899_v11, 1  ;;  %v955_v38 = vrot.slane %v3353_v12, 1  ;;  %v957_v49 = vrot.slane %v901_v30, 1 }
  0x8a   :  { %v958_v58 = vrot.slane %v3359_v59, 1  ;;  %v960_v27 = vrot.slane %v903_v15, 1  ;;  %v961_v25 = vrot.slane %v3365_v14, 1  ;;  %v963_v37 = vrot.slane %v905_v40, 1 }
  0x8b   :  { %v964_v19 = vrot.slane %v3371_v28, 1  ;;  %v966_v31 = vrot.slane %v907_v5, 1  ;;  %v967_v23 = vrot.slane %v3377_v21, 1  ;;  %v969_v56 = vrot.slane %v909_v63, 1 }
  0x8c   :  { %v970_v41 = vrot.slane %v3383_v55, 1  ;;  %v972_v61 = vrot.slane %v911_v62, 1  ;;  %v973_v29 = vrot.slane %v3389_v2, 1  ;;  %v975_v11 = vrot.slane %v913_v35, 1 }
  0x8d   :  { %v976_v12 = vrot.slane %v3395_v50, 1  ;;  %v947_v30 = vsel %vm503_vm0, %v945_v3, %v946_v45  ;;  %v950_v59 = vsel %vm503_vm0, %v948_v47, %v949_v22  ;;  %v978_v15 = vrot.slane %v915_v51, 1 }
  0x8e   :  { %v979_v14 = vrot.slane %v3401_v52, 1  ;;  %v953_v40 = vsel %vm503_vm0, %v951_v8, %v952_v44  ;;  %v956_v28 = vsel %vm503_vm0, %v954_v20, %v955_v38  ;;  %v981_v5 = vrot.slane %v917_v26, 1 }
  0x8f   :  { %v982_v21 = vrot.slane %v3407_v13, 1  ;;  %v959_v63 = vsel %vm503_vm0, %v957_v49, %v958_v58  ;;  %v962_v55 = vsel %vm503_vm0, %v960_v27, %v961_v25  ;;  %v965_v62 = vsel %vm503_vm0, %v963_v37, %v964_v19  ;;  %v2281_v27 = vld [vmem:[#allocation3 + $0x4] sm:$0xf] }
  0x90   :  { %v968_v2 = vsel %vm503_vm0, %v966_v31, %v967_v23  ;;  %v971_v35 = vsel %vm503_vm0, %v969_v56, %v970_v41  ;;  %v974_v50 = vsel %vm503_vm0, %v972_v61, %v973_v29  ;;  %v977_v51 = vsel %vm503_vm0, %v975_v11, %v976_v12  ;;  %v3534_v56 = vld [vmem:[%s5285_s0] sm:$0xff]  ;;  %v3541_v61 = vld [vmem:[%s5285_s0 + $0x8] sm:$0xff]  ;;  %v3550_v11 = vld [vmem:[%s5285_s0 + $0x10] sm:$0xff] }
  0x91   :  { %v3434_v52 = vadd.f32 %v947_v30, %v3254_v46  ;;  %v980_v26 = vsel %vm503_vm0, %v978_v15, %v979_v14  ;;  %v3438_v13 = vadd.f32 %v946_v45, %v3257_v17  ;;  %v3441_v3 = vadd.f32 %v950_v59, %v3260_v24  ;;  %5667 = vst [vmem:[#allocation6_spill] sm:$0xff] %v3534_v56  ;;  %v3557_v30 = vld [vmem:[%s5285_s0 + $0x18] sm:$0xff]  ;;  %v3566_v15 = vld [vmem:[%s5285_s0 + $0x20] sm:$0xff] }
  0x92   :  { %v3444_v47 = vadd.f32 %v949_v22, %v3264_v0  ;;  %v983_v8 = vsel %vm503_vm0, %v981_v5, %v982_v21  ;;  %v3448_v20 = vadd.f32 %v953_v40, %v3267_v60  ;;  %v3451_v49 = vadd.f32 %v952_v44, %v3270_v18  ;;  %5668 = vst [vmem:[#allocation41_spill] sm:$0xff] %v3541_v61  ;;  %v3575_v40 = vld [vmem:[%s5285_s0 + $0x28] sm:$0xff]  ;;  %v3584_v5 = vld [vmem:[%s5285_s0 + $0x30] sm:$0xff] }
  0x93   :  { %v3454_v46 = vadd.f32 %v956_v28, %v3273_v54  ;;  %v3457_v17 = vadd.f32 %v955_v38, %v3276_v16  ;;  %v3460_v24 = vadd.f32 %v959_v63, %v3279_v57  ;;  %v3463_v0 = vadd.f32 %v958_v58, %v3282_v39  ;;  %5669 = vst [vmem:[#allocation27_spill] sm:$0xff] %v3550_v11  ;;  %v3593_v63 = vld [vmem:[%s5285_s0 + $0x38] sm:$0xff] }
  0x94   :  { %v3466_v45 = vadd.f32 %v962_v55, %v3285_v1  ;;  %v3469_v60 = vadd.f32 %v961_v25, %v3288_v4  ;;  %v3472_v18 = vadd.f32 %v965_v62, %v3291_v42  ;;  %v3475_v54 = vadd.f32 %v964_v19, %v3294_v10  ;;  %v5657_v4 = vld [vmem:[#allocation4_spill] sm:$0xff]  ;;  %5670 = vst [vmem:[#allocation11_spill] sm:$0xff] %v3557_v30  ;;  %v3602_v62 = vld [vmem:[%s5285_s0 + $0x40] sm:$0xff] }
  0x95   :  { %v3478_v16 = vadd.f32 %v968_v2, %v3297_v32  ;;  %v3481_v57 = vadd.f32 %v967_v23, %v3300_v43  ;;  %v3484_v39 = vadd.f32 %v971_v35, %v3303_v6  ;;  %v3487_v1 = vadd.f32 %v970_v41, %v3306_v36  ;;  %5671 = vst [vmem:[#allocation12_spill] sm:$0xff] %v3566_v15  ;;  %v3611_v35 = vld [vmem:[%s5285_s0 + $0x48] sm:$0xff] }
  0x96   :  { %v1038_v25 = vsub.s32 2, %v5657_v4  ;;  %v3491_v42 = vadd.f32 %v974_v50, %v3309_v9  ;;  %v3494_v10 = vadd.f32 %v973_v29, %v3312_v7  ;;  %v3497_v32 = vadd.f32 %v977_v51, %v3315_v34  ;;  %v2280_v9 = vld [vmem:[#allocation3] sm:$0xf]  ;;  %5672 = vst [vmem:[#allocation13_spill] sm:$0xff] %v3575_v40  ;;  %5673 = vst [vmem:[#allocation14_spill] sm:$0xff] %v3584_v5  ;;  %v3620_v51 = vld [vmem:[%s5285_s0 + $0x50] sm:$0xff] }
  0x97   :  { %v3500_v43 = vsub.s32 3, %v5657_v4  ;;  %v3503_v6 = vadd.f32 %v976_v12, %v3318_v48  ;;  %v3506_v36 = vadd.f32 %v980_v26, %v3321_v33  ;;  %v3509_v58 = vadd.f32 %v979_v14, %v3324_v53  ;;  %v5659_v7 = vld [vmem:[#allocation42_spill] sm:$0xff]  ;;  %v2282_v48 = vld [vmem:[#allocation3 + $0x8] sm:$0xf]  ;;  %v2283_v33 = vld [vmem:[#allocation3 + $0xc] sm:$0xf] }
  0x98   :  { %v3511_v22 = vrot.slane %v2280_v9, %v1038_v25  ;;  %v3514_v44 = vadd.f32 %v983_v8, %v5659_v7  ;;  %v5660_v34 = vld [vmem:[#allocation22_spill] sm:$0xff]  ;;  %v3519_v37 = vrot.slane %v2281_v27, %v1038_v25  ;;  %v3521_v19 = vrot.slane %v2282_v48, %v1038_v25  ;;  %5674 = vst [vmem:[#allocation15_spill] sm:$0xff] %v3593_v63  ;;  %v3629_v8 = vld [vmem:[%s5285_s0 + $0x58] sm:$0xff]  ;;  %v3645_v7 = vld [vmem:[%s5285_s0 + $0x68] sm:$0xff] }
  0x99   :  { %5658 = vst [vmem:[#allocation7_spill] sm:$0xff] %v3500_v43  ;;  %v3517_v38 = vadd.f32 %v982_v21, %v5660_v34  ;;  %v3523_v31 = vrot.slane %v2283_v33, %v1038_v25  ;;  %v3526_v53 = vrot.slane %v2280_v9, %v3500_v43  ;;  %v3529_v23 = vrot.slane %v2281_v27, %v3500_v43  ;;  %v3638_v25 = vld [vmem:[%s5285_s0 + $0x60] sm:$0xff]  ;;  %v3654_v27 = vld [vmem:[%s5285_s0 + $0x70] sm:$0xff]  ;;  %v3661_v33 = vld [vmem:[%s5285_s0 + $0x78] sm:$0xff] }
  0x9a   :  { %5662 = vst [vmem:[#allocation5_spill] sm:$0xff] %v3519_v37  ;;  %5663 = vst [vmem:[#allocation23_spill] sm:$0xff] %v3521_v19  ;;  %v1040_v41 = vmul.f32 %v3534_v56, %v3511_v22  ;;  %v3545_v29 = vmul.f32 %v3541_v61, %v3511_v22  ;;  %v1042_v12 = vmul.f32 %v3550_v11, %v3511_v22  ;;  %v3677_v56 = vld [vmem:[%s5285_s0 + $0x88] sm:$0xff] }
  0x9b   :  { %5661 = vst [vmem:[#allocation8_spill] sm:$0xff] %v3517_v38  ;;  %5664 = vst [vmem:[#allocation9_spill] sm:$0xff] %v3523_v31  ;;  %v3561_v59 = vmul.f32 %v3557_v30, %v3511_v22  ;;  %v3570_v14 = vmul.f32 %v3566_v15, %v3511_v22  ;;  %v3579_v28 = vmul.f32 %v3575_v40, %v3511_v22  ;;  %v3686_v31 = vld [vmem:[%s5285_s0 + $0x90] sm:$0xff] }
  0x9c   :  { %5665 = vst [vmem:[#allocation10_spill] sm:$0xff] %v3526_v53  ;;  %5666 = vst [vmem:[#allocation16_spill] sm:$0xff] %v3529_v23  ;;  %v3588_v21 = vmul.f32 %v3584_v5, %v3511_v22  ;;  %v3597_v55 = vmul.f32 %v3593_v63, %v3511_v22  ;;  %v3606_v2 = vmul.f32 %v3602_v62, %v3511_v22  ;;  %v3670_v23 = vld [vmem:[%s5285_s0 + $0x80] sm:$0xff] }
  0x9d   :  { %5675 = vst [vmem:[#allocation17_spill] sm:$0xff] %v3602_v62  ;;  %5676 = vst [vmem:[#allocation18_spill] sm:$0xff] %v3611_v35  ;;  %v3615_v50 = vmul.f32 %v3611_v35, %v3511_v22  ;;  %v3624_v26 = vmul.f32 %v3620_v51, %v3511_v22  ;;  %v3633_v4 = vmul.f32 %v3629_v8, %v3511_v22  ;;  %v3736_v35 = vld [vmem:[%s5285_s0 + $0xc0] sm:$0xff]  ;;  %v3743_v62 = vld [vmem:[%s5285_s0 + $0xc8] sm:$0xff] }
  0x9e   :  { %5677 = vst [vmem:[#allocation19_spill] sm:$0xff] %v3620_v51  ;;  %5678 = vst [vmem:[#allocation24_spill] sm:$0xff] %v3629_v8  ;;  %v1052_v9 = vmul.f32 %v3638_v25, %v3511_v22  ;;  %v3649_v34 = vmul.f32 %v3645_v7, %v3511_v22  ;;  %v1054_v48 = vmul.f32 %v3654_v27, %v3511_v22  ;;  %v3719_v8 = vld [vmem:[%s5285_s0 + $0xb0] sm:$0xff]  ;;  %v3726_v51 = vld [vmem:[%s5285_s0 + $0xb8] sm:$0xff]  ;;  %v1102_v5 = vrot.slane %v3588_v21, 2 }
  0x9f   :  { %5679 = vst [vmem:[#allocation25_spill] sm:$0xff] %v3638_v25  ;;  %5680 = vst [vmem:[#allocation26_spill] sm:$0xff] %v3645_v7  ;;  %v3665_v43 = vmul.f32 %v3661_v33, %v3511_v22  ;;  %v1056_v61 = vmul.f32 %v3670_v23, %v3511_v22  ;;  %v3681_v53 = vmul.f32 %v3677_v56, %v3511_v22  ;;  %v1093_v25 = vrot.slane %v1040_v41, 2 }
  0xa0   :  { %5681 = vst [vmem:[#allocation28_spill] sm:$0xff] %v3654_v27  ;;  %5682 = vst [vmem:[#allocation29_spill] sm:$0xff] %v3661_v33  ;;  %v1058_v19 = vmul.f32 %v3686_v31, %v3511_v22  ;;  %v1096_v41 = vrot.slane %v1042_v12, 2  ;;  %v1099_v12 = vrot.slane %v3570_v14, 2  ;;  %v1103_v40 = vrot.slane %v3597_v55, 2 }
  0xa1   :  { %5683 = vst [vmem:[#allocation30_spill] sm:$0xff] %v3670_v23  ;;  %5684 = vst [vmem:[#allocation31_spill] sm:$0xff] %v3677_v56  ;;  %v3693_v23 = vld [vmem:[%s5285_s0 + $0x98] sm:$0xff]  ;;  %v3702_v56 = vld [vmem:[%s5285_s0 + $0xa0] sm:$0xff]  ;;  %v1106_v30 = vrot.slane %v3615_v50, 2  ;;  %v1108_v11 = vrot.slane %v3624_v26, 2 }
  0xa2   :  { %5685 = vst [vmem:[#allocation32_spill] sm:$0xff] %v3686_v31  ;;  %5686 = vst [vmem:[#allocation33_spill] sm:$0xff] %v3693_v23  ;;  %v3697_v33 = vmul.f32 %v3693_v23, %v3511_v22  ;;  %v1060_v27 = vmul.f32 %v3702_v56, %v3511_v22  ;;  %v3709_v31 = vld [vmem:[%s5285_s0 + $0xa8] sm:$0xff]  ;;  %v1094_v23 = vrot.slane %v3545_v29, 2  ;;  %v1097_v29 = vrot.slane %v3561_v59, 2 }
  0xa3   :  { %5687 = vst [vmem:[#allocation34_spill] sm:$0xff] %v3702_v56  ;;  %5688 = vst [vmem:[#allocation35_spill] sm:$0xff] %v3709_v31  ;;  %v3713_v7 = vmul.f32 %v3709_v31, %v3511_v22  ;;  %v1062_v56 = vmul.f32 %v3719_v8, %v3511_v22  ;;  %v3730_v31 = vmul.f32 %v3726_v51, %v3511_v22  ;;  %v1100_v59 = vrot.slane %v3579_v28, 2 }
  0xa4   :  { %5689 = vst [vmem:[#allocation36_spill] sm:$0xff] %v3719_v8  ;;  %5690 = vst [vmem:[#allocation37_spill] sm:$0xff] %v3726_v51  ;;  %v1064_v8 = vmul.f32 %v3736_v35, %v3511_v22  ;;  %v1065_v51 = vmul.f32 %v3743_v62, %v3511_v22  ;;  %v1095_v63 = vsel %vm1092_vm1, %v1093_v25, %v1094_v23  ;;  %v1109_v22 = vrot.slane %v3633_v4, 2 }
  0xa5   :  { %5691 = vst [vmem:[#allocation38_spill] sm:$0xff] %v3736_v35  ;;  %5692 = vst [vmem:[#allocation20_spill] sm:$0xff] %v3743_v62  ;;  %v1105_v35 = vrot.slane %v3606_v2, 2  ;;  %v1098_v15 = vsel %vm1092_vm1, %v1096_v41, %v1097_v29  ;;  %v1111_v62 = vrot.slane %v1052_v9, 2  ;;  %v1112_v14 = vrot.slane %v3649_v34, 2 }
  0xa6   :  { %v1114_v28 = vrot.slane %v1054_v48, 2  ;;  %v1115_v25 = vrot.slane %v3665_v43, 2  ;;  %v1101_v21 = vsel %vm1092_vm1, %v1099_v12, %v1100_v59  ;;  %v1117_v37 = vrot.slane %v1056_v61, 2 }
  0xa7   :  { %v1118_v55 = vrot.slane %v3681_v53, 2  ;;  %v1120_v2 = vrot.slane %v1058_v19, 2  ;;  %v1104_v41 = vsel %vm1092_vm1, %v1102_v5, %v1103_v40  ;;  %v1121_v50 = vrot.slane %v3697_v33, 2 }
  0xa8   :  { %v1123_v38 = vrot.slane %v1060_v27, 2  ;;  %v1124_v26 = vrot.slane %v3713_v7, 2  ;;  %v1107_v4 = vsel %vm1092_vm1, %v1105_v35, %v1106_v30  ;;  %v1126_v9 = vrot.slane %v1062_v56, 2 }
  0xa9   :  { %v1127_v34 = vrot.slane %v3730_v31, 2  ;;  %v1129_v48 = vrot.slane %v1064_v8, 2  ;;  %v1110_v43 = vsel %vm1092_vm1, %v1108_v11, %v1109_v22  ;;  %v1113_v61 = vsel %vm1092_vm1, %v1111_v62, %v1112_v14 }
  0xaa   :  { %v1116_v53 = vsel %vm1092_vm1, %v1114_v28, %v1115_v25  ;;  %v1130_v19 = vrot.slane %v1065_v51, 2  ;;  %v1119_v5 = vsel %vm1092_vm1, %v1117_v37, %v1118_v55  ;;  %v1122_v33 = vsel %vm1092_vm1, %v1120_v2, %v1121_v50  ;;  %v5700_v51 = vld [vmem:[#allocation13_spill] sm:$0xff] }
  0xab   :  { %v1125_v27 = vsel %vm1092_vm1, %v1123_v38, %v1124_v26  ;;  %v3773_v7 = vadd.f32 %v1095_v63, %v3434_v52  ;;  %v1128_v56 = vsel %vm1092_vm1, %v1126_v9, %v1127_v34  ;;  %v3777_v31 = vadd.f32 %v1094_v23, %v3438_v13  ;;  %v5709_v9 = vld [vmem:[#allocation28_spill] sm:$0xff] }
  0xac   :  { %v3780_v11 = vadd.f32 %v1098_v15, %v3441_v3  ;;  %v3783_v62 = vadd.f32 %v1097_v29, %v3444_v47  ;;  %v1131_v37 = vsel %vm1092_vm1, %v1129_v48, %v1130_v19  ;;  %v3787_v35 = vadd.f32 %v1101_v21, %v3448_v20  ;;  %v5697_v15 = vld [vmem:[#allocation27_spill] sm:$0xff]  ;;  %v5710_v48 = vld [vmem:[#allocation29_spill] sm:$0xff] }
  0xad   :  { %v3790_v38 = vadd.f32 %v1100_v59, %v3451_v49  ;;  %v3793_v52 = vadd.f32 %v1104_v41, %v3454_v46  ;;  %v3796_v13 = vadd.f32 %v1103_v40, %v3457_v17  ;;  %v3799_v3 = vadd.f32 %v1107_v4, %v3460_v24  ;;  %v5702_v29 = vld [vmem:[#allocation15_spill] sm:$0xff]  ;;  %v5703_v59 = vld [vmem:[#allocation17_spill] sm:$0xff] }
  0xae   :  { %v3802_v47 = vadd.f32 %v1106_v30, %v3463_v0  ;;  %v3805_v23 = vadd.f32 %v1110_v43, %v3466_v45  ;;  %v3808_v20 = vadd.f32 %v1109_v22, %v3469_v60  ;;  %v3811_v49 = vadd.f32 %v1113_v61, %v3472_v18  ;;  %v5707_v41 = vld [vmem:[#allocation25_spill] sm:$0xff]  ;;  %v5711_v61 = vld [vmem:[#allocation30_spill] sm:$0xff] }
  0xaf   :  { %v3814_v46 = vadd.f32 %v1112_v14, %v3475_v54  ;;  %v3817_v17 = vadd.f32 %v1116_v53, %v3478_v16  ;;  %v3820_v24 = vadd.f32 %v1115_v25, %v3481_v57  ;;  %v3823_v0 = vadd.f32 %v1119_v5, %v3484_v39  ;;  %v5704_v14 = vld [vmem:[#allocation18_spill] sm:$0xff]  ;;  %v5705_v25 = vld [vmem:[#allocation19_spill] sm:$0xff] }
  0xb0   :  { %v3826_v45 = vadd.f32 %v1118_v55, %v3487_v1  ;;  %v3829_v60 = vadd.f32 %v1122_v33, %v3491_v42  ;;  %v3832_v18 = vadd.f32 %v1121_v50, %v3494_v10  ;;  %v3835_v54 = vadd.f32 %v1125_v27, %v3497_v32  ;;  %v5694_v42 = vld [vmem:[#allocation8_spill] sm:$0xff]  ;;  %v5696_v10 = vld [vmem:[#allocation5_spill] sm:$0xff]  ;;  %v5698_v32 = vld [vmem:[#allocation11_spill] sm:$0xff] }
  0xb1   :  { %v3838_v16 = vadd.f32 %v1124_v26, %v3503_v6  ;;  %v3841_v57 = vadd.f32 %v1128_v56, %v3506_v36  ;;  %v3844_v39 = vadd.f32 %v1127_v34, %v3509_v58  ;;  %v3847_v1 = vadd.f32 %v1131_v37, %v3514_v44  ;;  %v5699_v6 = vld [vmem:[#allocation12_spill] sm:$0xff]  ;;  %v5701_v44 = vld [vmem:[#allocation14_spill] sm:$0xff]  ;;  %v5714_v56 = vld [vmem:[#allocation33_spill] sm:$0xff] }
  0xb2   :  { %v3850_v30 = vadd.f32 %v1130_v19, %v5694_v42  ;;  %v1188_v40 = vmul.f32 %v5697_v15, %v5696_v10  ;;  %v3856_v63 = vmul.f32 %v5698_v32, %v5696_v10  ;;  %v1190_v36 = vmul.f32 %v5699_v6, %v5696_v10  ;;  %v5706_v55 = vld [vmem:[#allocation24_spill] sm:$0xff]  ;;  %v5708_v26 = vld [vmem:[#allocation26_spill] sm:$0xff]  ;;  %v5712_v19 = vld [vmem:[#allocation31_spill] sm:$0xff] }
  0xb3   :  { %5693 = vst [vmem:[#allocation39_spill] sm:$0xff] %v3847_v1  ;;  %v3862_v58 = vmul.f32 %v5700_v51, %v5696_v10  ;;  %v1192_v8 = vmul.f32 %v5701_v44, %v5696_v10  ;;  %v3868_v12 = vmul.f32 %v5702_v29, %v5696_v10  ;;  %v1194_v22 = vmul.f32 %v5703_v59, %v5696_v10  ;;  %v5713_v33 = vld [vmem:[#allocation32_spill] sm:$0xff]  ;;  %v5715_v42 = vld [vmem:[#allocation34_spill] sm:$0xff]  ;;  %v5716_v15 = vld [vmem:[#allocation35_spill] sm:$0xff] }
  0xb4   :  { %5695 = vst [vmem:[#allocation21_spill] sm:$0xff] %v3850_v30  ;;  %v3874_v28 = vmul.f32 %v5704_v14, %v5696_v10  ;;  %v1196_v21 = vmul.f32 %v5705_v25, %v5696_v10  ;;  %v3880_v2 = vmul.f32 %v5706_v55, %v5696_v10  ;;  %v1198_v50 = vmul.f32 %v5707_v41, %v5696_v10 }
  0xb5   :  { %v3886_v4 = vmul.f32 %v5708_v26, %v5696_v10  ;;  %v1200_v34 = vmul.f32 %v5709_v9, %v5696_v10  ;;  %v3892_v43 = vmul.f32 %v5710_v48, %v5696_v10  ;;  %v1202_v53 = vmul.f32 %v5711_v61, %v5696_v10  ;;  %v5717_v61 = vld [vmem:[#allocation36_spill] sm:$0xff] }
  0xb6   :  { %v3898_v5 = vmul.f32 %v5712_v19, %v5696_v10  ;;  %v1204_v27 = vmul.f32 %v5713_v33, %v5696_v10  ;;  %v3904_v37 = vmul.f32 %v5714_v56, %v5696_v10  ;;  %v1206_v32 = vmul.f32 %v5715_v42, %v5696_v10  ;;  %v5718_v19 = vld [vmem:[#allocation37_spill] sm:$0xff]  ;;  %v5719_v56 = vld [vmem:[#allocation38_spill] sm:$0xff]  ;;  %v5720_v42 = vld [vmem:[#allocation20_spill] sm:$0xff] }
  0xb7   :  { %v3910_v48 = vmul.f32 %v5716_v15, %v5696_v10  ;;  %v1208_v9 = vmul.f32 %v5717_v61, %v5696_v10  ;;  %v3916_v26 = vmul.f32 %v5718_v19, %v5696_v10  ;;  %v1240_v41 = vrot.slane %v1188_v40, 2  ;;  %v3928_v15 = vld [vmem:[%s5285_s0 + $0xd0] sm:$0xff] }
  0xb8   :  { %v1241_v33 = vrot.slane %v3856_v63, 2  ;;  %v1243_v55 = vrot.slane %v1190_v36, 2  ;;  %v1210_v25 = vmul.f32 %v5719_v56, %v5696_v10  ;;  %v3923_v14 = vmul.f32 %v5720_v42, %v5696_v10  ;;  %5721 = vst [vmem:[#allocation40_spill] sm:$0xff] %v3928_v15  ;;  %v3936_v63 = vld [vmem:[%s5285_s0 + $0xd8] sm:$0xff] }
  0xb9   :  { %v1212_v19 = vmul.f32 %v3928_v15, %v5696_v10  ;;  %v1244_v40 = vrot.slane %v3862_v58, 2  ;;  %5722 = vst [vmem:[#allocation4_spill] sm:$0xff] %v3936_v63  ;;  %v1213_v36 = vmul.f32 %v3936_v63, %v5696_v10  ;;  %v1246_v42 = vrot.slane %v1192_v8, 2 }
  0xba   :  { %v1247_v56 = vrot.slane %v3868_v12, 2  ;;  %v1249_v61 = vrot.slane %v1194_v22, 2  ;;  %v1242_v59 = vsel %vm1092_vm1, %v1240_v41, %v1241_v33  ;;  %v1250_v29 = vrot.slane %v3874_v28, 2 }
  0xbb   :  { %v1252_v44 = vrot.slane %v1196_v21, 2  ;;  %v1253_v15 = vrot.slane %v3880_v2, 2  ;;  %v1245_v58 = vsel %vm1092_vm1, %v1243_v55, %v1244_v40  ;;  %v1255_v51 = vrot.slane %v1198_v50, 2 }
  0xbc   :  { %v1256_v6 = vrot.slane %v3886_v4, 2  ;;  %v1258_v30 = vrot.slane %v1200_v34, 2  ;;  %v1259_v1 = vrot.slane %v3892_v43, 2  ;;  %v1261_v10 = vrot.slane %v1202_v53, 2 }
  0xbd   :  { %v1262_v8 = vrot.slane %v3898_v5, 2  ;;  %v1264_v12 = vrot.slane %v1204_v27, 2  ;;  %v1248_v22 = vsel %vm1092_vm1, %v1246_v42, %v1247_v56  ;;  %v1265_v41 = vrot.slane %v3904_v37, 2 }
  0xbe   :  { %v1267_v28 = vrot.slane %v1206_v32, 2  ;;  %v1268_v21 = vrot.slane %v3910_v48, 2  ;;  %v1251_v2 = vsel %vm1092_vm1, %v1249_v61, %v1250_v29  ;;  %v1270_v55 = vrot.slane %v1208_v9, 2 }
  0xbf   :  { %v1271_v50 = vrot.slane %v3916_v26, 2  ;;  %v1273_v4 = vrot.slane %v1210_v25, 2  ;;  %v1254_v34 = vsel %vm1092_vm1, %v1252_v44, %v1253_v15  ;;  %v1257_v43 = vsel %vm1092_vm1, %v1255_v51, %v1256_v6 }
  0xc0   :  { %v1274_v53 = vrot.slane %v3923_v14, 2  ;;  %v1276_v5 = vrot.slane %v1212_v19, 2  ;;  %v1260_v27 = vsel %vm1092_vm1, %v1258_v30, %v1259_v1  ;;  %v1263_v37 = vsel %vm1092_vm1, %v1261_v10, %v1262_v8 }
  0xc1   :  { %v1266_v32 = vsel %vm1092_vm1, %v1264_v12, %v1265_v41  ;;  %v1277_v48 = vrot.slane %v1213_v36, 2  ;;  %v1269_v61 = vsel %vm1092_vm1, %v1267_v28, %v1268_v21  ;;  %v1272_v9 = vsel %vm1092_vm1, %v1270_v55, %v1271_v50  ;;  %v5736_v28 = vld [vmem:[#allocation25_spill] sm:$0xff] }
  0xc2   :  { %v3962_v25 = vadd.f32 %v1242_v59, %v3773_v7  ;;  %v3965_v44 = vadd.f32 %v1241_v33, %v3777_v31  ;;  %v1275_v51 = vsel %vm1092_vm1, %v1273_v4, %v1274_v53  ;;  %v3969_v14 = vadd.f32 %v1245_v58, %v3780_v11  ;;  %v5733_v58 = vld [vmem:[#allocation18_spill] sm:$0xff] }
  0xc3   :  { %v3972_v30 = vadd.f32 %v1244_v40, %v3783_v62  ;;  %v3975_v26 = vadd.f32 %v1248_v22, %v3787_v35  ;;  %v1278_v19 = vsel %vm1092_vm1, %v1276_v5, %v1277_v48  ;;  %v3979_v42 = vadd.f32 %v1247_v56, %v3790_v38  ;;  %v5731_v56 = vld [vmem:[#allocation15_spill] sm:$0xff]  ;;  %v5732_v40 = vld [vmem:[#allocation17_spill] sm:$0xff]  ;;  %v5735_v22 = vld [vmem:[#allocation24_spill] sm:$0xff] }
  0xc4   :  { %v3982_v7 = vadd.f32 %v1251_v2, %v3793_v52  ;;  %v3985_v31 = vadd.f32 %v1250_v29, %v3796_v13  ;;  %v3988_v11 = vadd.f32 %v1254_v34, %v3799_v3  ;;  %v3991_v62 = vadd.f32 %v1253_v15, %v3802_v47  ;;  %v5737_v2 = vld [vmem:[#allocation26_spill] sm:$0xff]  ;;  %v5739_v34 = vld [vmem:[#allocation29_spill] sm:$0xff] }
  0xc5   :  { %v3994_v35 = vadd.f32 %v1257_v43, %v3805_v23  ;;  %v3997_v59 = vadd.f32 %v1256_v6, %v3808_v20  ;;  %v4000_v38 = vadd.f32 %v1260_v27, %v3811_v49  ;;  %v4003_v52 = vadd.f32 %v1259_v1, %v3814_v46  ;;  %v5728_v6 = vld [vmem:[#allocation12_spill] sm:$0xff]  ;;  %v5741_v27 = vld [vmem:[#allocation31_spill] sm:$0xff] }
  0xc6   :  { %v4006_v13 = vadd.f32 %v1263_v37, %v3817_v17  ;;  %v4009_v3 = vadd.f32 %v1262_v8, %v3820_v24  ;;  %v4012_v47 = vadd.f32 %v1266_v32, %v3823_v0  ;;  %v4015_v23 = vadd.f32 %v1265_v41, %v3826_v45  ;;  %v5723_v45 = vld [vmem:[#allocation39_spill] sm:$0xff]  ;;  %v5742_v32 = vld [vmem:[#allocation32_spill] sm:$0xff] }
  0xc7   :  { %v4018_v20 = vadd.f32 %v1269_v61, %v3829_v60  ;;  %v4021_v49 = vadd.f32 %v1268_v21, %v3832_v18  ;;  %v4024_v46 = vadd.f32 %v1272_v9, %v3835_v54  ;;  %v4027_v17 = vadd.f32 %v1271_v50, %v3838_v16  ;;  %v5725_v60 = vld [vmem:[#allocation21_spill] sm:$0xff]  ;;  %v5727_v18 = vld [vmem:[#allocation23_spill] sm:$0xff]  ;;  %v5730_v16 = vld [vmem:[#allocation14_spill] sm:$0xff] }
  0xc8   :  { %v4030_v24 = vadd.f32 %v1275_v51, %v3841_v57  ;;  %v4033_v0 = vadd.f32 %v1274_v53, %v3844_v39  ;;  %v4036_v1 = vadd.f32 %v1278_v19, %v5723_v45  ;;  %v4039_v15 = vadd.f32 %v1277_v48, %v5725_v60  ;;  %v5729_v54 = vld [vmem:[#allocation13_spill] sm:$0xff]  ;;  %v5734_v8 = vld [vmem:[#allocation19_spill] sm:$0xff]  ;;  %v5738_v50 = vld [vmem:[#allocation28_spill] sm:$0xff] }
  0xc9   :  { %v1335_v29 = vmul.f32 %v5728_v6, %v5727_v18  ;;  %v4045_v33 = vmul.f32 %v5729_v54, %v5727_v18  ;;  %v1337_v57 = vmul.f32 %v5730_v16, %v5727_v18  ;;  %v4051_v39 = vmul.f32 %v5731_v56, %v5727_v18  ;;  %v5740_v53 = vld [vmem:[#allocation30_spill] sm:$0xff]  ;;  %v5743_v61 = vld [vmem:[#allocation33_spill] sm:$0xff]  ;;  %v5745_v45 = vld [vmem:[#allocation35_spill] sm:$0xff] }
  0xca   :  { %5724 = vst [vmem:[#allocation42_spill] sm:$0xff] %v4036_v1  ;;  %5726 = vst [vmem:[#allocation22_spill] sm:$0xff] %v4039_v15  ;;  %v1339_v36 = vmul.f32 %v5732_v40, %v5727_v18  ;;  %v4057_v10 = vmul.f32 %v5733_v58, %v5727_v18  ;;  %v1341_v12 = vmul.f32 %v5734_v8, %v5727_v18  ;;  %v5744_v51 = vld [vmem:[#allocation34_spill] sm:$0xff]  ;;  %v5746_v54 = vld [vmem:[#allocation36_spill] sm:$0xff] }
  0xcb   :  { %v4063_v41 = vmul.f32 %v5735_v22, %v5727_v18  ;;  %v1343_v21 = vmul.f32 %v5736_v28, %v5727_v18  ;;  %v4069_v55 = vmul.f32 %v5737_v2, %v5727_v18  ;;  %v1345_v4 = vmul.f32 %v5738_v50, %v5727_v18  ;;  %v5750_v22 = vld [vmem:[#allocation40_spill] sm:$0xff] }
  0xcc   :  { %v4075_v43 = vmul.f32 %v5739_v34, %v5727_v18  ;;  %v1347_v5 = vmul.f32 %v5740_v53, %v5727_v18  ;;  %v4081_v37 = vmul.f32 %v5741_v27, %v5727_v18  ;;  %v1349_v48 = vmul.f32 %v5742_v32, %v5727_v18  ;;  %v5747_v27 = vld [vmem:[#allocation37_spill] sm:$0xff]  ;;  %v5748_v32 = vld [vmem:[#allocation38_spill] sm:$0xff] }
  0xcd   :  { %v4087_v9 = vmul.f32 %v5743_v61, %v5727_v18  ;;  %v1351_v19 = vmul.f32 %v5744_v51, %v5727_v18  ;;  %v4093_v60 = vmul.f32 %v5745_v45, %v5727_v18  ;;  %v1353_v6 = vmul.f32 %v5746_v54, %v5727_v18  ;;  %v5749_v61 = vld [vmem:[#allocation20_spill] sm:$0xff] }
  0xce   :  { %v4099_v53 = vmul.f32 %v5747_v27, %v5727_v18  ;;  %v1355_v34 = vmul.f32 %v5748_v32, %v5727_v18  ;;  %v4105_v50 = vmul.f32 %v5749_v61, %v5727_v18  ;;  %v1387_v2 = vrot.slane %v1335_v29, 2  ;;  %v4118_v32 = vld [vmem:[%s5285_s0 + $0xe0] sm:$0xff] }
  0xcf   :  { %v1388_v51 = vrot.slane %v4045_v33, 2  ;;  %v1390_v28 = vrot.slane %v1337_v57, 2  ;;  %v1391_v45 = vrot.slane %v4051_v39, 2  ;;  %v1357_v54 = vmul.f32 %v5750_v22, %v5727_v18  ;;  %5751 = vst [vmem:[#allocation8_spill] sm:$0xff] %v4118_v32  ;;  %v4125_v33 = vld [vmem:[%s5285_s0 + $0xe8] sm:$0xff] }
  0xd0   :  { %v4113_v27 = vmul.f32 %v3936_v63, %v5727_v18  ;;  %v1359_v29 = vmul.f32 %v4118_v32, %v5727_v18  ;;  %5752 = vst [vmem:[#allocation5_spill] sm:$0xff] %v4125_v33  ;;  %v1360_v57 = vmul.f32 %v4125_v33, %v5727_v18  ;;  %v1393_v39 = vrot.slane %v1339_v36, 2 }
  0xd1   :  { %v1394_v63 = vrot.slane %v4057_v10, 2  ;;  %v1396_v22 = vrot.slane %v1341_v12, 2  ;;  %v1397_v61 = vrot.slane %v4063_v41, 2  ;;  %v1389_v8 = vsel %vm1092_vm1, %v1387_v2, %v1388_v51 }
  0xd2   :  { %v1392_v58 = vsel %vm1092_vm1, %v1390_v28, %v1391_v45  ;;  %v1399_v40 = vrot.slane %v1343_v21, 2  ;;  %v1400_v32 = vrot.slane %v4069_v55, 2  ;;  %v1402_v56 = vrot.slane %v1345_v4, 2 }
  0xd3   :  { %v1403_v16 = vrot.slane %v4075_v43, 2  ;;  %v1405_v15 = vrot.slane %v1347_v5, 2  ;;  %v1406_v1 = vrot.slane %v4081_v37, 2  ;;  %v1408_v18 = vrot.slane %v1349_v48, 2 }
  0xd4   :  { %v1409_v36 = vrot.slane %v4087_v9, 2  ;;  %v1411_v10 = vrot.slane %v1351_v19, 2  ;;  %v1412_v12 = vrot.slane %v4093_v60, 2  ;;  %v1395_v41 = vsel %vm1092_vm1, %v1393_v39, %v1394_v63  ;;  %v5762_v39 = vld [vmem:[#allocation24_spill] sm:$0xff] }
  0xd5   :  { %v1414_v2 = vrot.slane %v1353_v6, 2  ;;  %v1415_v28 = vrot.slane %v4099_v53, 2  ;;  %v1417_v21 = vrot.slane %v1355_v34, 2  ;;  %v1398_v55 = vsel %vm1092_vm1, %v1396_v22, %v1397_v61 }
  0xd6   :  { %v1401_v4 = vsel %vm1092_vm1, %v1399_v40, %v1400_v32  ;;  %v1418_v43 = vrot.slane %v4105_v50, 2  ;;  %v1420_v5 = vrot.slane %v1357_v54, 2  ;;  %v1404_v37 = vsel %vm1092_vm1, %v1402_v56, %v1403_v16 }
  0xd7   :  { %v1421_v48 = vrot.slane %v4113_v27, 2  ;;  %v1423_v9 = vrot.slane %v1359_v29, 2  ;;  %v1424_v19 = vrot.slane %v1360_v57, 2  ;;  %v1407_v60 = vsel %vm1092_vm1, %v1405_v15, %v1406_v1 }
  0xd8   :  { %v1410_v6 = vsel %vm1092_vm1, %v1408_v18, %v1409_v36  ;;  %v1413_v53 = vsel %vm1092_vm1, %v1411_v10, %v1412_v12  ;;  %v1416_v34 = vsel %vm1092_vm1, %v1414_v2, %v1415_v28  ;;  %v1419_v22 = vsel %vm1092_vm1, %v1417_v21, %v1418_v43  ;;  %v5765_v2 = vld [vmem:[#allocation28_spill] sm:$0xff]  ;;  %v5766_v21 = vld [vmem:[#allocation29_spill] sm:$0xff] }
  0xd9   :  { %v4151_v40 = vadd.f32 %v1389_v8, %v3962_v25  ;;  %v4154_v54 = vadd.f32 %v1388_v51, %v3965_v44  ;;  %v4157_v56 = vadd.f32 %v1392_v58, %v3969_v14  ;;  %v1422_v50 = vsel %vm1092_vm1, %v1420_v5, %v1421_v48  ;;  %v5761_v51 = vld [vmem:[#allocation19_spill] sm:$0xff] }
  0xda   :  { %v1425_v15 = vsel %vm1092_vm1, %v1423_v9, %v1424_v19  ;;  %v4162_v27 = vadd.f32 %v1391_v45, %v3972_v30  ;;  %v4165_v29 = vadd.f32 %v1395_v41, %v3975_v26  ;;  %v4168_v57 = vadd.f32 %v1394_v63, %v3979_v42  ;;  %v5768_v5 = vld [vmem:[#allocation31_spill] sm:$0xff] }
  0xdb   :  { %v4171_v25 = vadd.f32 %v1398_v55, %v3982_v7  ;;  %v4174_v44 = vadd.f32 %v1397_v61, %v3985_v31  ;;  %v4177_v14 = vadd.f32 %v1401_v4, %v3988_v11  ;;  %v4180_v58 = vadd.f32 %v1400_v32, %v3991_v62  ;;  %v5760_v61 = vld [vmem:[#allocation18_spill] sm:$0xff] }
  0xdc   :  { %v4183_v30 = vadd.f32 %v1404_v37, %v3994_v35  ;;  %v4186_v26 = vadd.f32 %v1403_v16, %v3997_v59  ;;  %v4189_v63 = vadd.f32 %v1407_v60, %v4000_v38  ;;  %v4192_v42 = vadd.f32 %v1406_v1, %v4003_v52  ;;  %v5757_v16 = vld [vmem:[#allocation14_spill] sm:$0xff] }
  0xdd   :  { %v4195_v7 = vadd.f32 %v1410_v6, %v4006_v13  ;;  %v4198_v31 = vadd.f32 %v1409_v36, %v4009_v3  ;;  %v4201_v11 = vadd.f32 %v1413_v53, %v4012_v47  ;;  %v4204_v62 = vadd.f32 %v1412_v12, %v4015_v23  ;;  %v5753_v47 = vld [vmem:[#allocation42_spill] sm:$0xff]  ;;  %v5763_v36 = vld [vmem:[#allocation25_spill] sm:$0xff] }
  0xde   :  { %v4207_v35 = vadd.f32 %v1416_v34, %v4018_v20  ;;  %v4210_v59 = vadd.f32 %v1415_v28, %v4021_v49  ;;  %v4213_v38 = vadd.f32 %v1419_v22, %v4024_v46  ;;  %v4216_v52 = vadd.f32 %v1418_v43, %v4027_v17  ;;  %v5754_v20 = vld [vmem:[#allocation22_spill] sm:$0xff]  ;;  %v5756_v49 = vld [vmem:[#allocation9_spill] sm:$0xff]  ;;  %v5758_v46 = vld [vmem:[#allocation15_spill] sm:$0xff] }
  0xdf   :  { %v4219_v13 = vadd.f32 %v1422_v50, %v4030_v24  ;;  %v4222_v3 = vadd.f32 %v1421_v48, %v4033_v0  ;;  %v4225_v23 = vadd.f32 %v1425_v15, %v5753_v47  ;;  %v4228_v1 = vadd.f32 %v1424_v19, %v5754_v20  ;;  %v5759_v17 = vld [vmem:[#allocation17_spill] sm:$0xff]  ;;  %v5764_v12 = vld [vmem:[#allocation26_spill] sm:$0xff]  ;;  %v5769_v48 = vld [vmem:[#allocation32_spill] sm:$0xff] }
  0xe0   :  { %v1482_v8 = vmul.f32 %v5757_v16, %v5756_v49  ;;  %v4234_v32 = vmul.f32 %v5758_v46, %v5756_v49  ;;  %v1484_v24 = vmul.f32 %v5759_v17, %v5756_v49  ;;  %v4240_v0 = vmul.f32 %v5760_v61, %v5756_v49  ;;  %v5767_v4 = vld [vmem:[#allocation30_spill] sm:$0xff]  ;;  %v5770_v19 = vld [vmem:[#allocation33_spill] sm:$0xff]  ;;  %v5772_v34 = vld [vmem:[#allocation35_spill] sm:$0xff] }
  0xe1   :  { %5755 = vst [vmem:[#allocation39_spill] sm:$0xff] %v4228_v1  ;;  %v1486_v45 = vmul.f32 %v5761_v51, %v5756_v49  ;;  %v4246_v18 = vmul.f32 %v5762_v39, %v5756_v49  ;;  %v1488_v10 = vmul.f32 %v5763_v36, %v5756_v49  ;;  %v4252_v41 = vmul.f32 %v5764_v12, %v5756_v49  ;;  %v5771_v6 = vld [vmem:[#allocation34_spill] sm:$0xff]  ;;  %v5773_v50 = vld [vmem:[#allocation36_spill] sm:$0xff]  ;;  %v5774_v47 = vld [vmem:[#allocation37_spill] sm:$0xff] }
  0xe2   :  { %v1490_v28 = vmul.f32 %v5765_v2, %v5756_v49  ;;  %v4258_v55 = vmul.f32 %v5766_v21, %v5756_v49  ;;  %v1492_v43 = vmul.f32 %v5767_v4, %v5756_v49  ;;  %v4264_v37 = vmul.f32 %v5768_v5, %v5756_v49 }
  0xe3   :  { %v1494_v9 = vmul.f32 %v5769_v48, %v5756_v49  ;;  %v4270_v60 = vmul.f32 %v5770_v19, %v5756_v49  ;;  %v1496_v53 = vmul.f32 %v5771_v6, %v5756_v49  ;;  %v4276_v22 = vmul.f32 %v5772_v34, %v5756_v49  ;;  %v5775_v48 = vld [vmem:[#allocation38_spill] sm:$0xff]  ;;  %v5776_v19 = vld [vmem:[#allocation20_spill] sm:$0xff] }
  0xe4   :  { %v1498_v15 = vmul.f32 %v5773_v50, %v5756_v49  ;;  %v4282_v20 = vmul.f32 %v5774_v47, %v5756_v49  ;;  %v1500_v5 = vmul.f32 %v5775_v48, %v5756_v49  ;;  %v4288_v4 = vmul.f32 %v5776_v19, %v5756_v49  ;;  %v5777_v6 = vld [vmem:[#allocation40_spill] sm:$0xff] }
  0xe5   :  { %v1502_v21 = vmul.f32 %v5777_v6, %v5756_v49  ;;  %v5778_v34 = vld [vmem:[#allocation4_spill] sm:$0xff]  ;;  %v1534_v12 = vrot.slane %v1482_v8, 2  ;;  %v1535_v47 = vrot.slane %v4234_v32, 2  ;;  %v1537_v39 = vrot.slane %v1484_v24, 2 }
  0xe6   :  { %v4294_v2 = vmul.f32 %v5778_v34, %v5756_v49  ;;  %v5779_v50 = vld [vmem:[#allocation8_spill] sm:$0xff]  ;;  %v1538_v48 = vrot.slane %v4240_v0, 2  ;;  %v4302_v19 = vmul.f32 %v4125_v33, %v5756_v49  ;;  %v1540_v24 = vrot.slane %v1486_v45, 2 }
  0xe7   :  { %v1504_v36 = vmul.f32 %v5779_v50, %v5756_v49  ;;  %v4307_v6 = vld [vmem:[%s5285_s0 + $0xf0] sm:$0xff]  ;;  %v4314_v50 = vld [vmem:[%s5285_s0 + $0xf8] sm:$0xff]  ;;  %v1541_v0 = vrot.slane %v4246_v18, 2  ;;  %v1543_v33 = vrot.slane %v1488_v10, 2  ;;  %v1544_v34 = vrot.slane %v4252_v41, 2 }
  0xe8   :  { %5780 = vst [vmem:[#allocation21_spill] sm:$0xff] %v4307_v6  ;;  %v1506_v8 = vmul.f32 %v4307_v6, %v5756_v49  ;;  %5781 = vst [vmem:[#allocation23_spill] sm:$0xff] %v4314_v50  ;;  %v4318_v32 = vmul.f32 %v4314_v50, %v5756_v49  ;;  %v1546_v51 = vrot.slane %v1490_v28, 2  ;;  %v1536_v61 = vsel %vm1092_vm1, %v1534_v12, %v1535_v47 }
  0xe9   :  { %v1539_v6 = vsel %vm1092_vm1, %v1537_v39, %v1538_v48  ;;  %v1547_v17 = vrot.slane %v4258_v55, 2  ;;  %v1549_v46 = vrot.slane %v1492_v43, 2  ;;  %v1550_v16 = vrot.slane %v4264_v37, 2 }
  0xea   :  { %v1552_v1 = vrot.slane %v1494_v9, 2  ;;  %v1553_v49 = vrot.slane %v4270_v60, 2  ;;  %v1555_v50 = vrot.slane %v1496_v53, 2  ;;  %v1556_v45 = vrot.slane %v4276_v22, 2 }
  0xeb   :  { %v1558_v18 = vrot.slane %v1498_v15, 2  ;;  %v1559_v10 = vrot.slane %v4282_v20, 2  ;;  %v1561_v41 = vrot.slane %v1500_v5, 2  ;;  %v1542_v28 = vsel %vm1092_vm1, %v1540_v24, %v1541_v0 }
  0xec   :  { %v1545_v12 = vsel %vm1092_vm1, %v1543_v33, %v1544_v34  ;;  %v1562_v39 = vrot.slane %v4288_v4, 2  ;;  %v1564_v55 = vrot.slane %v1502_v21, 2  ;;  %v1548_v43 = vsel %vm1092_vm1, %v1546_v51, %v1547_v17 }
  0xed   :  { %v1565_v37 = vrot.slane %v4294_v2, 2  ;;  %v1567_v9 = vrot.slane %v1504_v36, 2  ;;  %v1568_v60 = vrot.slane %v4302_v19, 2  ;;  %v1551_v53 = vsel %vm1092_vm1, %v1549_v46, %v1550_v16 }
  0xee   :  { %v1554_v22 = vsel %vm1092_vm1, %v1552_v1, %v1553_v49  ;;  %v1570_v15 = vrot.slane %v1506_v8, 2  ;;  %v1571_v5 = vrot.slane %v4318_v32, 2  ;;  %v1557_v20 = vsel %vm1092_vm1, %v1555_v50, %v1556_v45  ;;  %v5791_v32 = vld [vmem:[#allocation13_spill] sm:$0xff] }
  0xef   :  { %v1560_v33 = vsel %vm1092_vm1, %v1558_v18, %v1559_v10  ;;  %v1563_v21 = vsel %vm1092_vm1, %v1561_v41, %v1562_v39  ;;  %v4342_v51 = vadd.f32 %v1536_v61, %v4151_v40  ;;  %v1566_v36 = vsel %vm1092_vm1, %v1564_v55, %v1565_v37 }
  0xf0   :  { %v1569_v2 = vsel %vm1092_vm1, %v1567_v9, %v1568_v60  ;;  %v4347_v46 = vadd.f32 %v1535_v47, %v4154_v54  ;;  %v4350_v1 = vadd.f32 %v1539_v6, %v4157_v56  ;;  %v1572_v4 = vsel %vm1092_vm1, %v1570_v15, %v1571_v5  ;;  %v5789_v47 = vld [vmem:[#allocation11_spill] sm:$0xff]  ;;  %v5798_v9 = vld [vmem:[#allocation25_spill] sm:$0xff]  ;;  %v5800_v15 = vld [vmem:[#allocation28_spill] sm:$0xff] }
  0xf1   :  { %v4354_v19 = vadd.f32 %v1538_v48, %v4162_v27  ;;  %v4357_v50 = vadd.f32 %v1542_v28, %v4165_v29  ;;  %v4360_v40 = vadd.f32 %v1541_v0, %v4168_v57  ;;  %v4363_v61 = vadd.f32 %v1545_v12, %v4171_v25  ;;  %v5792_v0 = vld [vmem:[#allocation14_spill] sm:$0xff] }
  0xf2   :  { %v4366_v54 = vadd.f32 %v1544_v34, %v4174_v44  ;;  %v4369_v56 = vadd.f32 %v1548_v43, %v4177_v14  ;;  %v4372_v6 = vadd.f32 %v1547_v17, %v4180_v58  ;;  %v4375_v27 = vadd.f32 %v1551_v53, %v4183_v30  ;;  %v5786_v17 = vld [vmem:[#allocation6_spill] sm:$0xff]  ;;  %v5797_v43 = vld [vmem:[#allocation24_spill] sm:$0xff] }
  0xf3   :  { %v4378_v29 = vadd.f32 %v1550_v16, %v4186_v26  ;;  %v4381_v57 = vadd.f32 %v1554_v22, %v4189_v63  ;;  %v4384_v25 = vadd.f32 %v1553_v49, %v4192_v42  ;;  %v4387_v44 = vadd.f32 %v1557_v20, %v4195_v7  ;;  %v5795_v28 = vld [vmem:[#allocation18_spill] sm:$0xff]  ;;  %v5801_v20 = vld [vmem:[#allocation29_spill] sm:$0xff] }
  0xf4   :  { %v4390_v14 = vadd.f32 %v1556_v45, %v4198_v31  ;;  %v4393_v58 = vadd.f32 %v1560_v33, %v4201_v11  ;;  %v4396_v30 = vadd.f32 %v1559_v10, %v4204_v62  ;;  %v4399_v26 = vadd.f32 %v1563_v21, %v4207_v35  ;;  %v5783_v35 = vld [vmem:[#allocation39_spill] sm:$0xff]  ;;  %v5794_v10 = vld [vmem:[#allocation17_spill] sm:$0xff]  ;;  %v5799_v53 = vld [vmem:[#allocation26_spill] sm:$0xff] }
  0xf5   :  { %v4402_v63 = vadd.f32 %v1562_v39, %v4210_v59  ;;  %v4405_v42 = vadd.f32 %v1566_v36, %v4213_v38  ;;  %v4408_v7 = vadd.f32 %v1565_v37, %v4216_v52  ;;  %v4411_v31 = vadd.f32 %v1569_v2, %v4219_v13  ;;  %v5785_v59 = vld [vmem:[#allocation10_spill] sm:$0xff]  ;;  %v5787_v38 = vld [vmem:[#allocation41_spill] sm:$0xff]  ;;  %v5788_v52 = vld [vmem:[#allocation27_spill] sm:$0xff] }
  0xf6   :  { %v4414_v11 = vadd.f32 %v1568_v60, %v4222_v3  ;;  %v4417_v62 = vadd.f32 %v1572_v4, %v4225_v23  ;;  %v4420_v16 = vadd.f32 %v1571_v5, %v5783_v35  ;;  %v1629_v48 = vmul.f32 %v5786_v17, %v5785_v59  ;;  %v5790_v23 = vld [vmem:[#allocation12_spill] sm:$0xff]  ;;  %v5793_v45 = vld [vmem:[#allocation15_spill] sm:$0xff]  ;;  %v5802_v21 = vld [vmem:[#allocation30_spill] sm:$0xff] }
  0xf7   :  { %v4426_v34 = vmul.f32 %v5787_v38, %v5785_v59  ;;  %v1631_v13 = vmul.f32 %v5788_v52, %v5785_v59  ;;  %v4432_v3 = vmul.f32 %v5789_v47, %v5785_v59  ;;  %v1633_v8 = vmul.f32 %v5790_v23, %v5785_v59  ;;  %v5796_v39 = vld [vmem:[#allocation19_spill] sm:$0xff]  ;;  %v5804_v35 = vld [vmem:[#allocation32_spill] sm:$0xff]  ;;  %v5805_v38 = vld [vmem:[#allocation33_spill] sm:$0xff] }
  0xf8   :  { %5782 = vst [vmem:[#allocation42_spill] sm:$0xff] %v4417_v62  ;;  %5784 = vst [vmem:[#allocation22_spill] sm:$0xff] %v4420_v16  ;;  %v4438_v24 = vmul.f32 %v5791_v32, %v5785_v59  ;;  %v1635_v49 = vmul.f32 %v5792_v0, %v5785_v59  ;;  %v4444_v18 = vmul.f32 %v5793_v45, %v5785_v59  ;;  %v5803_v2 = vld [vmem:[#allocation31_spill] sm:$0xff]  ;;  %v5810_v0 = vld [vmem:[#allocation38_spill] sm:$0xff] }
  0xf9   :  { %v1637_v41 = vmul.f32 %v5794_v10, %v5785_v59  ;;  %v4450_v12 = vmul.f32 %v5795_v28, %v5785_v59  ;;  %v1639_v55 = vmul.f32 %v5796_v39, %v5785_v59  ;;  %v4456_v37 = vmul.f32 %v5797_v43, %v5785_v59  ;;  %v5809_v10 = vld [vmem:[#allocation37_spill] sm:$0xff]  ;;  %v5811_v32 = vld [vmem:[#allocation20_spill] sm:$0xff] }
  0xfa   :  { %v1641_v60 = vmul.f32 %v5798_v9, %v5785_v59  ;;  %v4462_v22 = vmul.f32 %v5799_v53, %v5785_v59  ;;  %v1643_v5 = vmul.f32 %v5800_v15, %v5785_v59  ;;  %v4468_v33 = vmul.f32 %v5801_v20, %v5785_v59  ;;  %v5806_v15 = vld [vmem:[#allocation34_spill] sm:$0xff]  ;;  %v5807_v20 = vld [vmem:[#allocation35_spill] sm:$0xff] }
  0xfb   :  { %v1645_v36 = vmul.f32 %v5802_v21, %v5785_v59  ;;  %v4474_v4 = vmul.f32 %v5803_v2, %v5785_v59  ;;  %v1647_v17 = vmul.f32 %v5804_v35, %v5785_v59  ;;  %v4480_v53 = vmul.f32 %v5805_v38, %v5785_v59  ;;  %v5808_v2 = vld [vmem:[#allocation36_spill] sm:$0xff] }
  0xfc   :  { %v1649_v9 = vmul.f32 %v5806_v15, %v5785_v59  ;;  %v4486_v43 = vmul.f32 %v5807_v20, %v5785_v59  ;;  %v1682_v39 = vrot.slane %v1629_v48, 3  ;;  %v1683_v21 = vrot.slane %v4426_v34, 3 }
  0xfd   :  { %v1651_v28 = vmul.f32 %v5808_v2, %v5785_v59  ;;  %v4493_v35 = vmul.f32 %v5809_v10, %v5785_v59  ;;  %v1685_v45 = vrot.slane %v1631_v13, 3  ;;  %v1686_v38 = vrot.slane %v4432_v3, 3 }
  0xfe   :  { %v1653_v15 = vmul.f32 %v5810_v0, %v5785_v59  ;;  %v1654_v20 = vmul.f32 %v5811_v32, %v5785_v59  ;;  %v1688_v23 = vrot.slane %v1633_v8, 3  ;;  %v1689_v48 = vrot.slane %v4438_v24, 3 }
  0xff   :  { %v1684_v34 = vsel %vm1681_vm2, %v1682_v39, %v1683_v21  ;;  %v1691_v47 = vrot.slane %v1635_v49, 3  ;;  %v1692_v2 = vrot.slane %v4444_v18, 3  ;;  %v1694_v52 = vrot.slane %v1637_v41, 3 }
 0x100   :  { %v1687_v10 = vsel %vm1681_vm2, %v1685_v45, %v1686_v38  ;;  %v1695_v13 = vrot.slane %v4450_v12, 3  ;;  %v1697_v3 = vrot.slane %v1639_v55, 3  ;;  %v1698_v16 = vrot.slane %v4456_v37, 3 }
 0x101   :  { %v1700_v0 = vrot.slane %v1641_v60, 3  ;;  %v1701_v62 = vrot.slane %v4462_v22, 3  ;;  %v1703_v59 = vrot.slane %v1643_v5, 3  ;;  %v1704_v8 = vrot.slane %v4468_v33, 3 }
 0x102   :  { %v1690_v24 = vsel %vm1681_vm2, %v1688_v23, %v1689_v48  ;;  %v1706_v39 = vrot.slane %v1645_v36, 3  ;;  %v1707_v49 = vrot.slane %v4474_v4, 3  ;;  %v1709_v18 = vrot.slane %v1647_v17, 3 }
 0x103   :  { %v1693_v41 = vsel %vm1681_vm2, %v1691_v47, %v1692_v2  ;;  %v1710_v45 = vrot.slane %v4480_v53, 3  ;;  %v1712_v12 = vrot.slane %v1649_v9, 3  ;;  %v1713_v55 = vrot.slane %v4486_v43, 3 }
 0x104   :  { %v1696_v37 = vsel %vm1681_vm2, %v1694_v52, %v1695_v13  ;;  %v1715_v60 = vrot.slane %v1651_v28, 3  ;;  %v1716_v22 = vrot.slane %v4493_v35, 3  ;;  %v1718_v5 = vrot.slane %v1653_v15, 3 }
 0x105   :  { %v1699_v33 = vsel %vm1681_vm2, %v1697_v3, %v1698_v16  ;;  %v1702_v23 = vsel %vm1681_vm2, %v1700_v0, %v1701_v62  ;;  %v1705_v36 = vsel %vm1681_vm2, %v1703_v59, %v1704_v8  ;;  %v1719_v4 = vrot.slane %v1654_v20, 3  ;;  %v5821_v3 = vld [vmem:[#allocation15_spill] sm:$0xff] }
 0x106   :  { %v1708_v47 = vsel %vm1681_vm2, %v1706_v39, %v1707_v49  ;;  %v1711_v53 = vsel %vm1681_vm2, %v1709_v18, %v1710_v45  ;;  %v1714_v9 = vsel %vm1681_vm2, %v1712_v12, %v1713_v55  ;;  %v4522_v43 = vadd.f32 %v1684_v34, %v4342_v51  ;;  %v5820_v34 = vld [vmem:[#allocation14_spill] sm:$0xff]  ;;  %v5824_v18 = vld [vmem:[#allocation19_spill] sm:$0xff] }
 0x107   :  { %v1717_v52 = vsel %vm1681_vm2, %v1715_v60, %v1716_v22  ;;  %v4526_v28 = vadd.f32 %v1683_v21, %v4347_v46  ;;  %v4529_v15 = vadd.f32 %v1687_v10, %v4350_v1  ;;  %v4532_v0 = vadd.f32 %v1686_v38, %v4354_v19  ;;  %v5816_v21 = vld [vmem:[#allocation27_spill] sm:$0xff]  ;;  %v5823_v39 = vld [vmem:[#allocation18_spill] sm:$0xff] }
 0x108   :  { %v1720_v20 = vsel %vm1681_vm2, %v1718_v5, %v1719_v4  ;;  %v4536_v35 = vadd.f32 %v1690_v24, %v4357_v50  ;;  %v4539_v17 = vadd.f32 %v1689_v48, %v4360_v40  ;;  %v4542_v51 = vadd.f32 %v1693_v41, %v4363_v61  ;;  %v5819_v48 = vld [vmem:[#allocation13_spill] sm:$0xff]  ;;  %v5827_v60 = vld [vmem:[#allocation26_spill] sm:$0xff]  ;;  %v5828_v5 = vld [vmem:[#allocation28_spill] sm:$0xff] }
 0x109   :  { %v4545_v46 = vadd.f32 %v1692_v2, %v4366_v54  ;;  %v4548_v1 = vadd.f32 %v1696_v37, %v4369_v56  ;;  %v4551_v19 = vadd.f32 %v1695_v13, %v4372_v6  ;;  %v4554_v10 = vadd.f32 %v1699_v33, %v4375_v27 }
 0x10a   :  { %v4557_v50 = vadd.f32 %v1698_v16, %v4378_v29  ;;  %v4560_v40 = vadd.f32 %v1702_v23, %v4381_v57  ;;  %v4563_v61 = vadd.f32 %v1701_v62, %v4384_v25  ;;  %v4566_v54 = vadd.f32 %v1705_v36, %v4387_v44  ;;  %v5829_v23 = vld [vmem:[#allocation29_spill] sm:$0xff] }
 0x10b   :  { %v4569_v56 = vadd.f32 %v1704_v8, %v4390_v14  ;;  %v4572_v6 = vadd.f32 %v1708_v47, %v4393_v58  ;;  %v4575_v27 = vadd.f32 %v1707_v49, %v4396_v30  ;;  %v4578_v29 = vadd.f32 %v1711_v53, %v4399_v26  ;;  %v5812_v30 = vld [vmem:[#allocation42_spill] sm:$0xff]  ;;  %v5822_v8 = vld [vmem:[#allocation17_spill] sm:$0xff]  ;;  %v5831_v53 = vld [vmem:[#allocation31_spill] sm:$0xff] }
 0x10c   :  { %v4581_v57 = vadd.f32 %v1710_v45, %v4402_v63  ;;  %v4584_v25 = vadd.f32 %v1714_v9, %v4405_v42  ;;  %v4587_v44 = vadd.f32 %v1713_v55, %v4408_v7  ;;  %v4590_v14 = vadd.f32 %v1717_v52, %v4411_v31  ;;  %v5813_v26 = vld [vmem:[#allocation22_spill] sm:$0xff]  ;;  %v5815_v63 = vld [vmem:[#allocation16_spill] sm:$0xff]  ;;  %v5817_v42 = vld [vmem:[#allocation11_spill] sm:$0xff] }
 0x10d   :  { %v4593_v58 = vadd.f32 %v1716_v22, %v4414_v11  ;;  %v4596_v62 = vadd.f32 %v1720_v20, %v5812_v30  ;;  %v4599_v16 = vadd.f32 %v1719_v4, %v5813_v26  ;;  %v1777_v2 = vmul.f32 %v5816_v21, %v5815_v63  ;;  %v5818_v7 = vld [vmem:[#allocation12_spill] sm:$0xff]  ;;  %v5826_v55 = vld [vmem:[#allocation25_spill] sm:$0xff]  ;;  %v5830_v4 = vld [vmem:[#allocation30_spill] sm:$0xff] }
 0x10e   :  { %v4605_v38 = vmul.f32 %v5817_v42, %v5815_v63  ;;  %v1779_v31 = vmul.f32 %v5818_v7, %v5815_v63  ;;  %v4611_v11 = vmul.f32 %v5819_v48, %v5815_v63  ;;  %v1781_v13 = vmul.f32 %v5820_v34, %v5815_v63  ;;  %v5825_v45 = vld [vmem:[#allocation24_spill] sm:$0xff]  ;;  %v5833_v30 = vld [vmem:[#allocation33_spill] sm:$0xff]  ;;  %v5834_v21 = vld [vmem:[#allocation34_spill] sm:$0xff] }
 0x10f   :  { %5814 = vst [vmem:[#allocation9_spill] sm:$0xff] %v4599_v16  ;;  %v4617_v59 = vmul.f32 %v5821_v3, %v5815_v63  ;;  %v1783_v24 = vmul.f32 %v5822_v8, %v5815_v63  ;;  %v4623_v49 = vmul.f32 %v5823_v39, %v5815_v63  ;;  %v1785_v41 = vmul.f32 %v5824_v18, %v5815_v63  ;;  %v5832_v52 = vld [vmem:[#allocation32_spill] sm:$0xff]  ;;  %v5835_v7 = vld [vmem:[#allocation35_spill] sm:$0xff]  ;;  %v5837_v8 = vld [vmem:[#allocation37_spill] sm:$0xff] }
 0x110   :  { %v4629_v12 = vmul.f32 %v5825_v45, %v5815_v63  ;;  %v1787_v37 = vmul.f32 %v5826_v55, %v5815_v63  ;;  %v4635_v22 = vmul.f32 %v5827_v60, %v5815_v63  ;;  %v1789_v33 = vmul.f32 %v5828_v5, %v5815_v63  ;;  %v5836_v34 = vld [vmem:[#allocation36_spill] sm:$0xff]  ;;  %v5838_v60 = vld [vmem:[#allocation38_spill] sm:$0xff] }
 0x111   :  { %v4641_v36 = vmul.f32 %v5829_v23, %v5815_v63  ;;  %v1791_v47 = vmul.f32 %v5830_v4, %v5815_v63  ;;  %v4647_v9 = vmul.f32 %v5831_v53, %v5815_v63  ;;  %v1793_v20 = vmul.f32 %v5832_v52, %v5815_v63  ;;  %v5839_v4 = vld [vmem:[#allocation40_spill] sm:$0xff] }
 0x112   :  { %v4653_v26 = vmul.f32 %v5833_v30, %v5815_v63  ;;  %v1795_v42 = vmul.f32 %v5834_v21, %v5815_v63  ;;  %v4659_v48 = vmul.f32 %v5835_v7, %v5815_v63  ;;  %v1797_v3 = vmul.f32 %v5836_v34, %v5815_v63  ;;  %v5840_v30 = vld [vmem:[#allocation4_spill] sm:$0xff] }
 0x113   :  { %v4665_v39 = vmul.f32 %v5837_v8, %v5815_v63  ;;  %v1829_v18 = vrot.slane %v1777_v2, 3  ;;  %v1830_v45 = vrot.slane %v4605_v38, 3  ;;  %v1832_v55 = vrot.slane %v1779_v31, 3 }
 0x114   :  { %v1799_v5 = vmul.f32 %v5838_v60, %v5815_v63  ;;  %v4672_v23 = vmul.f32 %v5811_v32, %v5815_v63  ;;  %v1801_v53 = vmul.f32 %v5839_v4, %v5815_v63  ;;  %v1833_v52 = vrot.slane %v4611_v11, 3 }
 0x115   :  { %v4679_v21 = vmul.f32 %v5840_v30, %v5815_v63  ;;  %v1835_v2 = vrot.slane %v1781_v13, 3  ;;  %v1836_v38 = vrot.slane %v4617_v59, 3  ;;  %v1838_v31 = vrot.slane %v1783_v24, 3 }
 0x116   :  { %v1831_v7 = vsel %vm1681_vm2, %v1829_v18, %v1830_v45  ;;  %v1839_v34 = vrot.slane %v4623_v49, 3  ;;  %v1841_v8 = vrot.slane %v1785_v41, 3  ;;  %v1842_v32 = vrot.slane %v4629_v12, 3 }
 0x117   :  { %v1834_v60 = vsel %vm1681_vm2, %v1832_v55, %v1833_v52  ;;  %v1844_v4 = vrot.slane %v1787_v37, 3  ;;  %v1845_v11 = vrot.slane %v4635_v22, 3  ;;  %v1847_v16 = vrot.slane %v1789_v33, 3 }
 0x118   :  { %v1848_v63 = vrot.slane %v4641_v36, 3  ;;  %v1850_v30 = vrot.slane %v1791_v47, 3  ;;  %v1851_v13 = vrot.slane %v4647_v9, 3  ;;  %v1853_v59 = vrot.slane %v1793_v20, 3 }
 0x119   :  { %v1837_v24 = vsel %vm1681_vm2, %v1835_v2, %v1836_v38  ;;  %v1854_v18 = vrot.slane %v4653_v26, 3  ;;  %v1856_v49 = vrot.slane %v1795_v42, 3  ;;  %v1857_v41 = vrot.slane %v4659_v48, 3 }
 0x11a   :  { %v1840_v12 = vsel %vm1681_vm2, %v1838_v31, %v1839_v34  ;;  %v1859_v55 = vrot.slane %v1797_v3, 3  ;;  %v1860_v37 = vrot.slane %v4665_v39, 3  ;;  %v1862_v22 = vrot.slane %v1799_v5, 3 }
 0x11b   :  { %v1843_v33 = vsel %vm1681_vm2, %v1841_v8, %v1842_v32  ;;  %v1846_v36 = vsel %vm1681_vm2, %v1844_v4, %v1845_v11  ;;  %v1863_v47 = vrot.slane %v4672_v23, 3  ;;  %v1865_v9 = vrot.slane %v1801_v53, 3 }
 0x11c   :  { %v1849_v20 = vsel %vm1681_vm2, %v1847_v16, %v1848_v63  ;;  %v1852_v26 = vsel %vm1681_vm2, %v1850_v30, %v1851_v13  ;;  %v1855_v42 = vsel %vm1681_vm2, %v1853_v59, %v1854_v18  ;;  %v1866_v48 = vrot.slane %v4679_v21, 3 }
 0x11d   :  { %v1858_v3 = vsel %vm1681_vm2, %v1856_v49, %v1857_v41  ;;  %v1861_v39 = vsel %vm1681_vm2, %v1859_v55, %v1860_v37  ;;  %v4704_v5 = vadd.f32 %v1831_v7, %v4522_v43  ;;  %v4707_v4 = vadd.f32 %v1830_v45, %v4526_v28  ;;  %v4832_v49 = vld [vmem:[%s5285_s0 + $0x58] sm:$0xff] }
 0x11e   :  { %v1864_v23 = vsel %vm1681_vm2, %v1862_v22, %v1863_v47  ;;  %v4711_v16 = vadd.f32 %v1834_v60, %v4529_v15  ;;  %v4714_v53 = vadd.f32 %v1833_v52, %v4532_v0  ;;  %v4717_v30 = vadd.f32 %v1837_v24, %v4536_v35  ;;  %v5841_v52 = vld [vmem:[#allocation7_spill] sm:$0xff]  ;;  %v4826_v24 = vld [vmem:[%s5285_s0 + $0x50] sm:$0xff]  ;;  %5850 = vst [vmem:[#allocation16_spill] sm:$0xff] %v4832_v49 }
 0x11f   :  { %v1867_v21 = vsel %vm1681_vm2, %v1865_v9, %v1866_v48  ;;  %v4721_v2 = vadd.f32 %v1836_v38, %v4539_v17  ;;  %v4724_v43 = vadd.f32 %v1840_v12, %v4542_v51  ;;  %v4727_v28 = vadd.f32 %v1839_v34, %v4545_v46  ;;  %5849 = vst [vmem:[#allocation22_spill] sm:$0xff] %v4826_v24  ;;  %v4840_v12 = vld [vmem:[%s5285_s0 + $0x60] sm:$0xff] }
 0x120   :  { %v4730_v15 = vadd.f32 %v1843_v33, %v4548_v1  ;;  %v4733_v0 = vadd.f32 %v1842_v32, %v4551_v19  ;;  %v4736_v35 = vadd.f32 %v1846_v36, %v4554_v10  ;;  %v4739_v45 = vadd.f32 %v1845_v11, %v4557_v50  ;;  %v4804_v32 = vld [vmem:[%s5285_s0 + $0x38] sm:$0xff]  ;;  %v4812_v11 = vld [vmem:[%s5285_s0 + $0x40] sm:$0xff]  ;;  %5851 = vst [vmem:[#allocation27_spill] sm:$0xff] %v4840_v12  ;;  %v4854_v33 = vld [vmem:[%s5285_s0 + $0x70] sm:$0xff] }
 0x121   :  { %v4742_v17 = vadd.f32 %v1849_v20, %v4560_v40  ;;  %v4745_v51 = vadd.f32 %v1848_v63, %v4563_v61  ;;  %v4748_v46 = vadd.f32 %v1852_v26, %v4566_v54  ;;  %v4751_v1 = vadd.f32 %v1851_v13, %v4569_v56  ;;  %5846 = vst [vmem:[#allocation41_spill] sm:$0xff] %v4804_v32  ;;  %v4818_v13 = vld [vmem:[%s5285_s0 + $0x48] sm:$0xff]  ;;  %v4868_v20 = vld [vmem:[%s5285_s0 + $0x80] sm:$0xff] }
 0x122   :  { %v4754_v19 = vadd.f32 %v1855_v42, %v4572_v6  ;;  %v4757_v10 = vadd.f32 %v1854_v18, %v4575_v27  ;;  %v4760_v50 = vadd.f32 %v1858_v3, %v4578_v29  ;;  %v4763_v40 = vadd.f32 %v1857_v41, %v4581_v57  ;;  %v2316_v6 = vld [vmem:[#allocation3 + $0x8] sm:$0xf]  ;;  %v5842_v57 = vld [vmem:[#allocation9_spill] sm:$0xff]  ;;  %5847 = vst [vmem:[#allocation20_spill] sm:$0xff] %v4812_v11  ;;  %v4882_v3 = vld [vmem:[%s5285_s0 + $0x90] sm:$0xff] }
 0x123   :  { %v4766_v61 = vadd.f32 %v1861_v39, %v4584_v25  ;;  %v4769_v54 = vadd.f32 %v1860_v37, %v4587_v44  ;;  %v4772_v56 = vadd.f32 %v1864_v23, %v4590_v14  ;;  %v1923_v38 = vrot.slane %v2316_v6, %v5841_v52  ;;  %v2317_v25 = vld [vmem:[#allocation3 + $0xc] sm:$0xf]  ;;  %v2318_v44 = vld [vmem:[%s5285_s0 + $0x20] sm:$0xff]  ;;  %5848 = vst [vmem:[#allocation42_spill] sm:$0xff] %v4818_v13  ;;  %v4888_v23 = vld [vmem:[%s5285_s0 + $0x98] sm:$0xff] }
 0x124   :  { %v4776_v27 = vadd.f32 %v1863_v47, %v4593_v58  ;;  %v4779_v29 = vadd.f32 %v1867_v21, %v4596_v62  ;;  %v4782_v31 = vadd.f32 %v1866_v48, %v5842_v57  ;;  %v4785_v7 = vrot.slane %v2317_v25, %v5841_v52  ;;  %v2319_v58 = vld [vmem:[%s5285_s0 + $0x28] sm:$0xff]  ;;  %v4798_v62 = vld [vmem:[%s5285_s0 + $0x30] sm:$0xff]  ;;  %5853 = vst [vmem:[#allocation12_spill] sm:$0xff] %v4854_v33  ;;  %v4860_v47 = vld [vmem:[%s5285_s0 + $0x78] sm:$0xff] }
 0x125   :  { %v1924_v14 = vmul.f32 %v2318_v44, %v1923_v38  ;;  %v4793_v34 = vmul.f32 %v2319_v58, %v1923_v38  ;;  %5845 = vst [vmem:[#allocation6_spill] sm:$0xff] %v4798_v62  ;;  %v1926_v8 = vmul.f32 %v4798_v62, %v1923_v38  ;;  %v4807_v60 = vmul.f32 %v4804_v32, %v1923_v38  ;;  %v4846_v37 = vld [vmem:[%s5285_s0 + $0x68] sm:$0xff]  ;;  %v4896_v6 = vld [vmem:[%s5285_s0 + $0xa0] sm:$0xff]  ;;  %v4910_v44 = vld [vmem:[%s5285_s0 + $0xb0] sm:$0xff] }
 0x126   :  { %5843 = vst [vmem:[#allocation39_spill] sm:$0xff] %v4782_v31  ;;  %5844 = vst [vmem:[#allocation10_spill] sm:$0xff] %v4785_v7  ;;  %v1928_v63 = vmul.f32 %v4812_v11, %v1923_v38  ;;  %v4821_v59 = vmul.f32 %v4818_v13, %v1923_v38  ;;  %v1930_v18 = vmul.f32 %v4826_v24, %v1923_v38  ;;  %v4874_v42 = vld [vmem:[%s5285_s0 + $0x88] sm:$0xff] }
 0x127   :  { %v4835_v41 = vmul.f32 %v4832_v49, %v1923_v38  ;;  %v1932_v55 = vmul.f32 %v4840_v12, %v1923_v38  ;;  %5852 = vst [vmem:[#allocation11_spill] sm:$0xff] %v4846_v37  ;;  %v4849_v22 = vmul.f32 %v4846_v37, %v1923_v38  ;;  %v1934_v36 = vmul.f32 %v4854_v33, %v1923_v38  ;;  %v4902_v57 = vld [vmem:[%s5285_s0 + $0xa8] sm:$0xff]  ;;  %v5866_v33 = vld [vmem:[#allocation4_spill] sm:$0xff]  ;;  %v5868_v49 = vld [vmem:[#allocation5_spill] sm:$0xff] }
 0x128   :  { %5854 = vst [vmem:[#allocation13_spill] sm:$0xff] %v4860_v47  ;;  %v4863_v9 = vmul.f32 %v4860_v47, %v1923_v38  ;;  %5855 = vst [vmem:[#allocation14_spill] sm:$0xff] %v4868_v20  ;;  %v1936_v26 = vmul.f32 %v4868_v20, %v1923_v38  ;;  %v4877_v48 = vmul.f32 %v4874_v42, %v1923_v38  ;;  %v5865_v20 = vld [vmem:[#allocation40_spill] sm:$0xff]  ;;  %v1976_v13 = vrot.slane %v1924_v14, 3 }
 0x129   :  { %5856 = vst [vmem:[#allocation15_spill] sm:$0xff] %v4874_v42  ;;  %5857 = vst [vmem:[#allocation17_spill] sm:$0xff] %v4882_v3  ;;  %v1938_v39 = vmul.f32 %v4882_v3, %v1923_v38  ;;  %v4891_v21 = vmul.f32 %v4888_v23, %v1923_v38  ;;  %v1940_v52 = vmul.f32 %v4896_v6, %v1923_v38  ;;  %v4930_v42 = vld [vmem:[%s5285_s0 + $0xc8] sm:$0xff]  ;;  %v5867_v37 = vld [vmem:[#allocation8_spill] sm:$0xff]  ;;  %v1979_v11 = vrot.slane %v1926_v8, 3 }
 0x12a   :  { %5858 = vst [vmem:[#allocation18_spill] sm:$0xff] %v4888_v23  ;;  %5859 = vst [vmem:[#allocation19_spill] sm:$0xff] %v4896_v6  ;;  %v4905_v25 = vmul.f32 %v4902_v57, %v1923_v38  ;;  %v1942_v58 = vmul.f32 %v4910_v44, %v1923_v38  ;;  %v4916_v23 = vld [vmem:[%s5285_s0 + $0xb8] sm:$0xff]  ;;  %v1946_v47 = vmul.f32 %v5865_v20, %v1923_v38  ;;  %v1980_v32 = vrot.slane %v4807_v60, 3 }
 0x12b   :  { %5860 = vst [vmem:[#allocation24_spill] sm:$0xff] %v4902_v57  ;;  %5861 = vst [vmem:[#allocation25_spill] sm:$0xff] %v4910_v44  ;;  %v4919_v6 = vmul.f32 %v4916_v23, %v1923_v38  ;;  %v4924_v57 = vld [vmem:[%s5285_s0 + $0xc0] sm:$0xff]  ;;  %v4933_v44 = vmul.f32 %v4930_v42, %v1923_v38  ;;  %v1948_v12 = vmul.f32 %v5867_v37, %v1923_v38  ;;  %v1982_v62 = vrot.slane %v1928_v63, 3 }
 0x12c   :  { %5862 = vst [vmem:[#allocation26_spill] sm:$0xff] %v4916_v23  ;;  %5863 = vst [vmem:[#allocation28_spill] sm:$0xff] %v4924_v57  ;;  %v1944_v3 = vmul.f32 %v4924_v57, %v1923_v38  ;;  %v4937_v23 = vmul.f32 %v5866_v33, %v1923_v38  ;;  %v4941_v24 = vmul.f32 %v5868_v49, %v1923_v38  ;;  %v1977_v57 = vrot.slane %v4793_v34, 3 }
 0x12d   :  { %5864 = vst [vmem:[#allocation29_spill] sm:$0xff] %v4930_v42  ;;  %v1983_v42 = vrot.slane %v4821_v59, 3  ;;  %v1985_v20 = vrot.slane %v1930_v18, 3  ;;  %v1986_v33 = vrot.slane %v4835_v41, 3  ;;  %v1988_v31 = vrot.slane %v1932_v55, 3 }
 0x12e   :  { %v1978_v7 = vsel %vm1681_vm2, %v1976_v13, %v1977_v57  ;;  %v1981_v37 = vsel %vm1681_vm2, %v1979_v11, %v1980_v32  ;;  %v1989_v14 = vrot.slane %v4849_v22, 3  ;;  %v1991_v49 = vrot.slane %v1934_v36, 3 }
 0x12f   :  { %v1984_v38 = vsel %vm1681_vm2, %v1982_v62, %v1983_v42  ;;  %v1987_v34 = vsel %vm1681_vm2, %v1985_v20, %v1986_v33  ;;  %v1992_v8 = vrot.slane %v4863_v9, 3  ;;  %v1994_v60 = vrot.slane %v1936_v26, 3 }
 0x130   :  { %v1995_v63 = vrot.slane %v4877_v48, 3  ;;  %v1990_v13 = vsel %vm1681_vm2, %v1988_v31, %v1989_v14  ;;  %v1997_v59 = vrot.slane %v1938_v39, 3  ;;  %v1998_v18 = vrot.slane %v4891_v21, 3 }
 0x131   :  { %v2000_v41 = vrot.slane %v1940_v52, 3  ;;  %v1993_v11 = vsel %vm1681_vm2, %v1991_v49, %v1992_v8  ;;  %v2001_v55 = vrot.slane %v4905_v25, 3  ;;  %v2003_v22 = vrot.slane %v1942_v58, 3 }
 0x132   :  { %v1996_v62 = vsel %vm1681_vm2, %v1994_v60, %v1995_v63  ;;  %v1999_v36 = vsel %vm1681_vm2, %v1997_v59, %v1998_v18  ;;  %v2004_v9 = vrot.slane %v4919_v6, 3  ;;  %v2006_v26 = vrot.slane %v1944_v3, 3  ;;  %v5880_v59 = vld [vmem:[#allocation12_spill] sm:$0xff] }
 0x133   :  { %v2007_v48 = vrot.slane %v4933_v44, 3  ;;  %v2002_v31 = vsel %vm1681_vm2, %v2000_v41, %v2001_v55  ;;  %v2009_v39 = vrot.slane %v1946_v47, 3  ;;  %v2010_v21 = vrot.slane %v4937_v23, 3  ;;  %v5881_v41 = vld [vmem:[#allocation13_spill] sm:$0xff] }
 0x134   :  { %v2012_v52 = vrot.slane %v1948_v12, 3  ;;  %v2005_v49 = vsel %vm1681_vm2, %v2003_v22, %v2004_v9  ;;  %v2013_v25 = vrot.slane %v4941_v24, 3  ;;  %v4968_v58 = vadd.f32 %v1978_v7, %v4704_v5  ;;  %v5883_v22 = vld [vmem:[#allocation15_spill] sm:$0xff] }
 0x135   :  { %v2008_v20 = vsel %vm1681_vm2, %v2006_v26, %v2007_v48  ;;  %v2011_v6 = vsel %vm1681_vm2, %v2009_v39, %v2010_v21  ;;  %v4972_v3 = vadd.f32 %v1977_v57, %v4707_v4  ;;  %v4975_v44 = vadd.f32 %v1981_v37, %v4711_v16  ;;  %v5872_v37 = vld [vmem:[#allocation6_spill] sm:$0xff]  ;;  %v5886_v39 = vld [vmem:[#allocation19_spill] sm:$0xff] }
 0x136   :  { %v4978_v47 = vadd.f32 %v1980_v32, %v4714_v53  ;;  %v2014_v12 = vsel %vm1681_vm2, %v2012_v52, %v2013_v25  ;;  %v4982_v23 = vadd.f32 %v1984_v38, %v4717_v30  ;;  %v4985_v24 = vadd.f32 %v1983_v42, %v4721_v2  ;;  %v5887_v52 = vld [vmem:[#allocation24_spill] sm:$0xff] }
 0x137   :  { %v4988_v5 = vadd.f32 %v1987_v34, %v4724_v43  ;;  %v4991_v4 = vadd.f32 %v1986_v33, %v4727_v28  ;;  %v4994_v16 = vadd.f32 %v1990_v13, %v4730_v15  ;;  %v4997_v53 = vadd.f32 %v1989_v14, %v4733_v0  ;;  %v5875_v33 = vld [vmem:[#allocation42_spill] sm:$0xff]  ;;  %v5877_v14 = vld [vmem:[#allocation16_spill] sm:$0xff] }
 0x138   :  { %v5000_v7 = vadd.f32 %v1993_v11, %v4736_v35  ;;  %v5003_v30 = vadd.f32 %v1992_v8, %v4739_v45  ;;  %v5006_v2 = vadd.f32 %v1996_v62, %v4742_v17  ;;  %v5009_v43 = vadd.f32 %v1995_v63, %v4745_v51  ;;  %v5878_v8 = vld [vmem:[#allocation27_spill] sm:$0xff]  ;;  %v5882_v62 = vld [vmem:[#allocation14_spill] sm:$0xff] }
 0x139   :  { %v5012_v28 = vadd.f32 %v1999_v36, %v4748_v46  ;;  %v5015_v15 = vadd.f32 %v1998_v18, %v4751_v1  ;;  %v5018_v0 = vadd.f32 %v2002_v31, %v4754_v19  ;;  %v5021_v35 = vadd.f32 %v2001_v55, %v4757_v10  ;;  %v5879_v63 = vld [vmem:[#allocation11_spill] sm:$0xff] }
 0x13a   :  { %v5024_v45 = vadd.f32 %v2005_v49, %v4760_v50  ;;  %v5027_v17 = vadd.f32 %v2004_v9, %v4763_v40  ;;  %v5030_v51 = vadd.f32 %v2008_v20, %v4766_v61  ;;  %v5033_v46 = vadd.f32 %v2007_v48, %v4769_v54  ;;  %v5869_v50 = vld [vmem:[#allocation39_spill] sm:$0xff]  ;;  %v5871_v40 = vld [vmem:[#allocation10_spill] sm:$0xff]  ;;  %v5873_v61 = vld [vmem:[#allocation41_spill] sm:$0xff] }
 0x13b   :  { %v5036_v1 = vadd.f32 %v2011_v6, %v4772_v56  ;;  %v5039_v19 = vadd.f32 %v2010_v21, %v4776_v27  ;;  %v5042_v10 = vadd.f32 %v2014_v12, %v4779_v29  ;;  %v5045_v32 = vadd.f32 %v2013_v25, %v5869_v50  ;;  %v5874_v54 = vld [vmem:[#allocation20_spill] sm:$0xff]  ;;  %v5876_v29 = vld [vmem:[#allocation22_spill] sm:$0xff]  ;;  %v5884_v9 = vld [vmem:[#allocation17_spill] sm:$0xff] }
 0x13c   :  { %v2071_v42 = vmul.f32 %v5872_v37, %v5871_v40  ;;  %v5051_v57 = vmul.f32 %v5873_v61, %v5871_v40  ;;  %v2073_v56 = vmul.f32 %v5874_v54, %v5871_v40  ;;  %v5057_v27 = vmul.f32 %v5875_v33, %v5871_v40  ;;  %v5885_v48 = vld [vmem:[#allocation18_spill] sm:$0xff]  ;;  %v5888_v20 = vld [vmem:[#allocation25_spill] sm:$0xff]  ;;  %v5890_v50 = vld [vmem:[#allocation28_spill] sm:$0xff] }
 0x13d   :  { %5870 = vst [vmem:[#allocation30_spill] sm:$0xff] %v5045_v32  ;;  %v2075_v38 = vmul.f32 %v5876_v29, %v5871_v40  ;;  %v5063_v34 = vmul.f32 %v5877_v14, %v5871_v40  ;;  %v2077_v60 = vmul.f32 %v5878_v8, %v5871_v40  ;;  %v5069_v13 = vmul.f32 %v5879_v63, %v5871_v40  ;;  %v5889_v6 = vld [vmem:[#allocation26_spill] sm:$0xff]  ;;  %v5891_v61 = vld [vmem:[#allocation29_spill] sm:$0xff]  ;;  %v2340_v33 = vld [vmem:[%s5285_s0 + $0xd0] sm:$0xff] }
 0x13e   :  { %v2079_v18 = vmul.f32 %v5880_v59, %v5871_v40  ;;  %v5075_v11 = vmul.f32 %v5881_v41, %v5871_v40  ;;  %v2081_v55 = vmul.f32 %v5882_v62, %v5871_v40  ;;  %v5081_v36 = vmul.f32 %v5883_v22, %v5871_v40  ;;  %v2341_v14 = vld [vmem:[%s5285_s0 + $0xd8] sm:$0xff]  ;;  %v5892_v63 = vld [vmem:[#allocation8_spill] sm:$0xff] }
 0x13f   :  { %v2083_v26 = vmul.f32 %v5884_v9, %v5871_v40  ;;  %v5087_v31 = vmul.f32 %v5885_v48, %v5871_v40  ;;  %v2085_v21 = vmul.f32 %v5886_v39, %v5871_v40  ;;  %v5093_v49 = vmul.f32 %v5887_v52, %v5871_v40  ;;  %v5893_v41 = vld [vmem:[#allocation5_spill] sm:$0xff]  ;;  %v5895_v48 = vld [vmem:[#allocation23_spill] sm:$0xff] }
 0x140   :  { %v2087_v25 = vmul.f32 %v5888_v20, %v5871_v40  ;;  %v5099_v12 = vmul.f32 %v5889_v6, %v5871_v40  ;;  %v2089_v37 = vmul.f32 %v5890_v50, %v5871_v40  ;;  %v5105_v54 = vmul.f32 %v5891_v61, %v5871_v40  ;;  %v5894_v22 = vld [vmem:[#allocation21_spill] sm:$0xff] }
 0x141   :  { %v2091_v29 = vmul.f32 %v2340_v33, %v5871_v40  ;;  %v5115_v8 = vmul.f32 %v2341_v14, %v5871_v40  ;;  %v2093_v59 = vmul.f32 %v5892_v63, %v5871_v40  ;;  %v5121_v62 = vmul.f32 %v5893_v41, %v5871_v40 }
 0x142   :  { %v2095_v9 = vmul.f32 %v5894_v22, %v5871_v40  ;;  %v5127_v39 = vmul.f32 %v5895_v48, %v5871_v40  ;;  %v2123_v52 = vrot.slane %v2071_v42, 3  ;;  %v2124_v20 = vrot.slane %v5051_v57, 3 }
 0x143   :  { %v2126_v6 = vrot.slane %v2073_v56, 3  ;;  %v2127_v50 = vrot.slane %v5057_v27, 3  ;;  %v2129_v61 = vrot.slane %v2075_v38, 3  ;;  %v2130_v33 = vrot.slane %v5063_v34, 3 }
 0x144   :  { %v2132_v14 = vrot.slane %v2077_v60, 3  ;;  %v2125_v63 = vsel %vm1681_vm2, %v2123_v52, %v2124_v20  ;;  %v2133_v41 = vrot.slane %v5069_v13, 3  ;;  %v2135_v22 = vrot.slane %v2079_v18, 3 }
 0x145   :  { %v2136_v40 = vrot.slane %v5075_v11, 3  ;;  %v2128_v42 = vsel %vm1681_vm2, %v2126_v6, %v2127_v50  ;;  %v2131_v57 = vsel %vm1681_vm2, %v2129_v61, %v2130_v33  ;;  %v2138_v56 = vrot.slane %v2081_v55, 3 }
 0x146   :  { %v2139_v48 = vrot.slane %v5081_v36, 3  ;;  %v2134_v27 = vsel %vm1681_vm2, %v2132_v14, %v2133_v41  ;;  %v2141_v34 = vrot.slane %v2083_v26, 3  ;;  %v2142_v60 = vrot.slane %v5087_v31, 3 }
 0x147   :  { %v2137_v38 = vsel %vm1681_vm2, %v2135_v22, %v2136_v40  ;;  %v2144_v13 = vrot.slane %v2085_v21, 3  ;;  %v2145_v18 = vrot.slane %v5093_v49, 3  ;;  %v2147_v11 = vrot.slane %v2087_v25, 3 }
 0x148   :  { %v2140_v52 = vsel %vm1681_vm2, %v2138_v56, %v2139_v48  ;;  %v2143_v6 = vsel %vm1681_vm2, %v2141_v34, %v2142_v60  ;;  %v2148_v61 = vrot.slane %v5099_v12, 3  ;;  %v2150_v55 = vrot.slane %v2089_v37, 3 }
 0x149   :  { %v2151_v36 = vrot.slane %v5105_v54, 3  ;;  %v2146_v14 = vsel %vm1681_vm2, %v2144_v13, %v2145_v18  ;;  %v2153_v32 = vrot.slane %v2091_v29, 3  ;;  %v2154_v26 = vrot.slane %v5115_v8, 3 }
 0x14a   :  { %v2156_v22 = vrot.slane %v2093_v59, 3  ;;  %v2149_v31 = vsel %vm1681_vm2, %v2147_v11, %v2148_v61  ;;  %v2157_v49 = vrot.slane %v5121_v62, 3  ;;  %v2159_v25 = vrot.slane %v2095_v9, 3 }
 0x14b   :  { %v2152_v21 = vsel %vm1681_vm2, %v2150_v55, %v2151_v36  ;;  %v2155_v56 = vsel %vm1681_vm2, %v2153_v32, %v2154_v26  ;;  %v2160_v12 = vrot.slane %v5127_v39, 3  ;;  %v2188_v37 = vadd.f32 %v2125_v63, %v4968_v58 }
 0x14c   :  { %v2189_v54 = vadd.f32 %v2124_v20, %v4972_v3  ;;  %v2158_v29 = vsel %vm1681_vm2, %v2156_v22, %v2157_v49  ;;  %v2190_v8 = vadd.f32 %v2128_v42, %v4975_v44  ;;  %v2191_v59 = vadd.f32 %v2127_v50, %v4978_v47 }
 0x14d   :  { %v2192_v34 = vadd.f32 %v2131_v57, %v4982_v23  ;;  %v2161_v13 = vsel %vm1681_vm2, %v2159_v25, %v2160_v12  ;;  %v2193_v62 = vadd.f32 %v2130_v33, %v4985_v24  ;;  %v2194_v32 = vadd.f32 %v2134_v27, %v4988_v5  ;;  %2215 = vst.msk [vmem:[%s5287_s2] sm:$0xff] %vm2214_vm3, %v2188_v37 }
 0x14e   :  { %v2195_v9 = vadd.f32 %v2133_v41, %v4991_v4  ;;  %2217 = vst.msk [vmem:[%s5287_s2 + $0x8] sm:$0x1f] %vm2216_vm4, %v2189_v54  ;;  %v2196_v58 = vadd.f32 %v2137_v38, %v4994_v16  ;;  %v2197_v3 = vadd.f32 %v2136_v40, %v4997_v53  ;;  %v2198_v44 = vadd.f32 %v2140_v52, %v5000_v7 }
 0x14f   :  { %v2199_v47 = vadd.f32 %v2139_v48, %v5003_v30  ;;  %2218 = vst.msk [vmem:[%s5287_s2 + $0x10] sm:$0xff] %vm2214_vm3, %v2190_v8  ;;  %2220 = vst.msk [vmem:[%s5287_s2 + $0x20] sm:$0xff] %vm2214_vm3, %v2192_v34  ;;  %v2200_v23 = vadd.f32 %v2143_v6, %v5006_v2  ;;  %v2201_v24 = vadd.f32 %v2142_v60, %v5009_v43 }
 0x150   :  { %2219 = vst.msk [vmem:[%s5287_s2 + $0x18] sm:$0x1f] %vm2216_vm4, %v2191_v59  ;;  %v2202_v5 = vadd.f32 %v2146_v14, %v5012_v28  ;;  %v2203_v4 = vadd.f32 %v2145_v18, %v5015_v15  ;;  %2221 = vst.msk [vmem:[%s5287_s2 + $0x28] sm:$0x1f] %vm2216_vm4, %v2193_v62  ;;  %v2204_v16 = vadd.f32 %v2149_v31, %v5018_v0 }
 0x151   :  { %2222 = vst.msk [vmem:[%s5287_s2 + $0x30] sm:$0xff] %vm2214_vm3, %v2194_v32  ;;  %v2205_v53 = vadd.f32 %v2148_v61, %v5021_v35  ;;  %v2206_v7 = vadd.f32 %v2152_v21, %v5024_v45  ;;  %v2207_v30 = vadd.f32 %v2151_v36, %v5027_v17  ;;  %2224 = vst.msk [vmem:[%s5287_s2 + $0x40] sm:$0xff] %vm2214_vm3, %v2196_v58  ;;  %v5896_v35 = vld [vmem:[#allocation30_spill] sm:$0xff] }
 0x152   :  { %2223 = vst.msk [vmem:[%s5287_s2 + $0x38] sm:$0x1f] %vm2216_vm4, %v2195_v9  ;;  %2225 = vst.msk [vmem:[%s5287_s2 + $0x48] sm:$0x1f] %vm2216_vm4, %v2197_v3  ;;  %v2208_v2 = vadd.f32 %v2155_v56, %v5030_v51  ;;  %v2209_v43 = vadd.f32 %v2154_v26, %v5033_v46  ;;  %v2210_v28 = vadd.f32 %v2158_v29, %v5036_v1 }
 0x153   :  { %2226 = vst.msk [vmem:[%s5287_s2 + $0x50] sm:$0xff] %vm2214_vm3, %v2198_v44  ;;  %v2211_v15 = vadd.f32 %v2157_v49, %v5039_v19  ;;  %2228 = vst.msk [vmem:[%s5287_s2 + $0x60] sm:$0xff] %vm2214_vm3, %v2200_v23  ;;  %v2212_v0 = vadd.f32 %v2161_v13, %v5042_v10  ;;  %v2213_v45 = vadd.f32 %v2160_v12, %v5896_v35 }
 0x154   :  { %2227 = vst.msk [vmem:[%s5287_s2 + $0x58] sm:$0x1f] %vm2216_vm4, %v2199_v47  ;;  %2229 = vst.msk [vmem:[%s5287_s2 + $0x68] sm:$0x1f] %vm2216_vm4, %v2201_v24 }
 0x155   :  { %2230 = vst.msk [vmem:[%s5287_s2 + $0x70] sm:$0xff] %vm2214_vm3, %v2202_v5  ;;  %2232 = vst.msk [vmem:[%s5287_s2 + $0x80] sm:$0xff] %vm2214_vm3, %v2204_v16 }
 0x156   :  { %2231 = vst.msk [vmem:[%s5287_s2 + $0x78] sm:$0x1f] %vm2216_vm4, %v2203_v4  ;;  %2233 = vst.msk [vmem:[%s5287_s2 + $0x88] sm:$0x1f] %vm2216_vm4, %v2205_v53 }
 0x157   :  { %2234 = vst.msk [vmem:[%s5287_s2 + $0x90] sm:$0xff] %vm2214_vm3, %v2206_v7  ;;  %2236 = vst.msk [vmem:[%s5287_s2 + $0xa0] sm:$0xff] %vm2214_vm3, %v2208_v2 }
 0x158   :  { %2235 = vst.msk [vmem:[%s5287_s2 + $0x98] sm:$0x1f] %vm2216_vm4, %v2207_v30  ;;  %2237 = vst.msk [vmem:[%s5287_s2 + $0xa8] sm:$0x1f] %vm2216_vm4, %v2209_v43 }
 0x159   :  { %2238 = vst.msk [vmem:[%s5287_s2 + $0xb0] sm:$0xff] %vm2214_vm3, %v2210_v28  ;;  %2240 = vst.msk [vmem:[%s5287_s2 + $0xc0] sm:$0xff] %vm2214_vm3, %v2212_v0 }
 0x15a   :  { %2239 = vst.msk [vmem:[%s5287_s2 + $0xb8] sm:$0x1f] %vm2216_vm4, %v2211_v15  ;;  %2241 = vst.msk [vmem:[%s5287_s2 + $0xc8] sm:$0x1f] %vm2216_vm4, %v2213_v45 }

</bundles_post_ra>
